<compile_context>
chip_gen: v6e
topology: v6e:2x2x1
jax: 0.10.0
libtpu: 0.0.40
codegen_flags: <defaults>
</compile_context>

<pallas_src>
import functools

import jax
import jax.numpy as jnp
from jax import lax
from jax.experimental import pallas as pl
from jax.experimental.pallas import tpu as pltpu


# ------------------------- fused MIC-layer kernel ----------------------------

def _micn_layer_kernel(*refs, nb, L, C, ks, L1s, k_isos, dks, last):
    """One full MIC layer (all branches + merge + FFN [+ projection]) for one
    batch row.  Ref order: src, per-branch (wc,bc,wi,bi,wt,bt), shared/merge/
    FFN params, [proj w,b], out, then per-branch scratch (cpad, y_scatter)."""
    f32, bf16 = jnp.float32, jnp.bfloat16

    n_in = 1 + 6 * nb + 12 + (2 if last else 0)
    src_ref = refs[0]
    br_refs = [refs[1 + 6 * i: 1 + 6 * (i + 1)] for i in range(nb)]
    base = 1 + 6 * nb
    (g_ref, b_ref, wm_ref, bm_ref, g1_ref, b1_ref,
     w1_ref, c1b_ref, w2_ref, c2b_ref, g2_ref, b2_ref) = refs[base:base + 12]
    if last:
        pw_ref, pb_ref = refs[base + 12: base + 14]
    out_ref = refs[n_in]
    scr = refs[n_in + 1:]

    def ln(v, g, b):   # LayerNorm over channels, f32
        mu = jnp.mean(v, axis=-1, keepdims=True)
        var = jnp.mean(jnp.square(v - mu), axis=-1, keepdims=True)
        return (v - mu) * lax.rsqrt(var + 1e-5) * g[...] + b[...]

    x = src_ref[0]                                            # [L, C] f32

    branch_outs = []
    for i in range(nb):
        k, L1, k_iso, dk = ks[i], L1s[i], k_isos[i], dks[i]
        wc_ref, bc_ref, wi_ref, bi_ref, wt_ref, bt_ref = br_refs[i]
        cpad, ysc = scr[2 * i], scr[2 * i + 1]
        pad_c = k // 2
        Lp = L + 2 * pad_c
        pd = (dk - 1) // 2

        # ---- series_decomp residual (edge-replicated moving average) -------
        if pd > 0:
            xp = jnp.concatenate(
                [jnp.broadcast_to(x[0:1, :], (pd, C)), x,
                 jnp.broadcast_to(x[L - 1:L, :], (pd, C))], axis=0)
        else:
            xp = x
        acc = xp[0:L, :]
        for j in range(1, dk):                                # small static unroll
            acc = acc + xp[j:j + L, :]
        seasonal = x - acc * (1.0 / dk)

        # ---- zero-padded conv input: single full-tile scratch store --------
        parts = []
        if pad_c > 0:
            parts.append(jnp.zeros((pad_c, C), f32))
        parts.append(seasonal)
        tail = Lp - pad_c - L
        if tail > 0:
            parts.append(jnp.zeros((tail, C), f32))
        cpad[...] = jnp.concatenate(parts, axis=0) if len(parts) > 1 else seasonal

        # ---- strided Conv1d(kernel=k, stride=k, padding=k//2) + tanh --------
        # k strided sublane slices -> one im2col matmul on the MXU.
        wins = [cpad[pl.ds(j, L1, stride=k), :] for j in range(k)]
        gathered = jnp.concatenate(wins, axis=-1) if k > 1 else wins[0]   # [L1,k*C]
        x1 = jnp.tanh(jnp.dot(gathered.astype(bf16), wc_ref[...],
                              preferred_element_type=f32) + bc_ref[...])  # [L1,C]

        # ---- isometric (causal) Conv1d + tanh: one im2col matmul ------------
        if L1 > 1:
            xcat = jnp.concatenate([jnp.zeros((L1 - 1, C), f32), x1], axis=0)
        else:
            xcat = x1
        slices = [xcat[j:j + L1, :] for j in range(k_iso)]
        gathered_i = (jnp.concatenate(slices, axis=-1)
                      if k_iso > 1 else slices[0])                        # [L1,k_iso*C]
        xi = jnp.tanh(jnp.dot(gathered_i.astype(bf16), wi_ref[...],
                              preferred_element_type=f32) + bi_ref[...])
        xn = ln(xi + x1, g_ref, b_ref)                                    # [L1,C]

        # ---- ConvTranspose1d(kernel=k, stride=k) + tanh, truncate to L ------
        # One matmul against the output-concatenated weight, then k strided
        # scatter-stores (row t -> output row t*k + j) into VMEM scratch.
        u = jnp.tanh(jnp.dot(xn.astype(bf16), wt_ref[...],
                             preferred_element_type=f32) + bt_ref[...])   # [L1,k*C]
        for j in range(k):
            ysc[pl.ds(j, L1, stride=k), :] = u[:, j * C:(j + 1) * C]
        y = ysc[0:L, :]
        branch_outs.append(ln(y + x, g_ref, b_ref))                       # [L,C]

    # ---- merge Conv2d over branches: one [L, nb*C] @ [nb*C, C] matmul -------
    gm = jnp.concatenate(branch_outs, axis=-1) if nb > 1 else branch_outs[0]
    merged = jnp.dot(gm.astype(bf16), wm_ref[...],
                     preferred_element_type=f32) + bm_ref[...]            # [L,C]
    y1 = ln(merged, g1_ref, b1_ref)

    # ---- FFN: C -> 4C -> C (no activation between, as in the module) --------
    h = jnp.dot(y1.astype(bf16), w1_ref[...],
                preferred_element_type=f32) + c1b_ref[...]
    y2 = jnp.dot(h.astype(bf16), w2_ref[...],
                 preferred_element_type=f32) + c2b_ref[...]
    dec_out = ln(merged + y2, g2_ref, b2_ref)                             # [L,C]

    if last:
        # lane-padded projection (CP = 128-multiple); sliced back in JAX
        out_ref[0] = jnp.dot(dec_out.astype(bf16), pw_ref[...],
                             preferred_element_type=f32) + pb_ref[...]
    else:
        out_ref[0] = dec_out


def micn_layer_call(src, lp, *, conv_kernel, decomp_kernel, last, proj):
    B, L, C = src.shape
    nb = len(conv_kernel)
    ks = tuple(int(k) for k in conv_kernel)
    dks = tuple(int(d) for d in decomp_kernel)
    L1s = tuple((L + 2 * (k // 2) - k) // k + 1 for k in ks)
    k_isos = tuple(int(lp['wi'][i].shape[0]) // C for i in range(nb))
    for i in range(nb):
        assert dks[i] % 2 == 1, "decomp kernel must be odd (series_decomp)"
        assert k_isos[i] == L1s[i], "isometric kernel must equal downsampled length"
        assert L1s[i] * ks[i] >= L, "transposed conv must cover the full length"

    inputs = [src]
    in_specs = [pl.BlockSpec((1, L, C), lambda b: (b, 0, 0))]

    def add(arr):
        inputs.append(arr)
        in_specs.append(pl.BlockSpec(arr.shape, lambda b, n=arr.ndim: (0,) * n))

    for i in range(nb):
        for name in ('wc', 'bc', 'wi', 'bi', 'wt', 'bt'):
            add(lp[name][i])
    for name in ('g', 'b', 'wm', 'bm', 'g1', 'b1',
                 'w1', 'c1b', 'w2', 'c2b', 'g2', 'b2'):
        add(lp[name])
    if last:
        add(proj['w'])
        add(proj['b'])
        out_c = proj['w'].shape[1]
    else:
        out_c = C

    scratch = []
    for i in range(nb):
        Lp = L + 2 * (ks[i] // 2)
        scratch.append(pltpu.VMEM((Lp, C), jnp.float32))            # padded conv in
        scratch.append(pltpu.VMEM((L1s[i] * ks[i], C), jnp.float32))  # convT scatter

    kern = functools.partial(_micn_layer_kernel, nb=nb, L=L, C=C, ks=ks,
                             L1s=L1s, k_isos=k_isos, dks=dks, last=last)
    return pl.pallas_call(
        kern,
        out_shape=jax.ShapeDtypeStruct((B, L, out_c), jnp.float32),
        grid=(B,),
        in_specs=in_specs,
        out_specs=pl.BlockSpec((1, L, out_c), lambda b: (b, 0, 0)),
        scratch_shapes=scratch,
        compiler_params=pltpu.CompilerParams(
            dimension_semantics=("parallel",),
            vmem_limit_bytes=64 * 1024 * 1024),
    )(*inputs)


# ----------------------------- model forward ---------------------------------

@functools.partial(jax.jit, static_argnames=("conv_kernel", "decomp_kernel", "c_out"))
def seasonal_prediction_forward(dec, prepped, conv_kernel, decomp_kernel, c_out):
    n_layers = len(prepped['mic'])
    for li, lp in enumerate(prepped['mic']):
        last = li == n_layers - 1
        dec = micn_layer_call(dec, lp,
                              conv_kernel=conv_kernel, decomp_kernel=decomp_kernel,
                              last=last, proj=prepped['proj'] if last else None)
    return dec[..., :c_out]


# ---------------------- parameter init & one-time prep -----------------------

def init_params(key, F, conv_kernel, iso_kernel, d_layers, c_out):
    """Parameters in PyTorch layout (Conv1d [Cout,Cin,k], ConvT [Cin,Cout,k])."""
    keys = iter(jax.random.split(key, 256))

    def nrm(shape, scale=0.05):
        return scale * jax.random.normal(next(keys), shape, jnp.float32)

    mic_layers = []
    for _ in range(d_layers):
        lp = {
            'conv': [{'w': nrm((F, F, k)), 'b': nrm((F,))} for k in conv_kernel],
            'conv_trans': [{'w': nrm((F, F, k)), 'b': nrm((F,))} for k in conv_kernel],
            'iso': [{'w': nrm((F, F, ki)), 'b': nrm((F,))} for ki in iso_kernel],
            'merge': {'w': nrm((F, F, len(conv_kernel), 1)), 'b': nrm((F,))},
            'conv1': {'w': nrm((4 * F, F, 1)), 'b': nrm((4 * F,))},
            'conv2': {'w': nrm((F, 4 * F, 1)), 'b': nrm((F,))},
            'norm':  {'g': jnp.ones((F,), jnp.float32), 'b': jnp.zeros((F,), jnp.float32)},
            'norm1': {'g': jnp.ones((F,), jnp.float32), 'b': jnp.zeros((F,), jnp.float32)},
            'norm2': {'g': jnp.ones((F,), jnp.float32), 'b': jnp.zeros((F,), jnp.float32)},
        }
        mic_layers.append(lp)
    return {'mic': mic_layers,
            'proj': {'w': nrm((c_out, F)), 'b': nrm((c_out,))}}


def prepare_params(params, conv_kernel, c_out):
    """Hoist all weight re-layouts / bf16 casts out of the forward (runs once)."""
    f32, bf16 = jnp.float32, jnp.bfloat16
    out = []
    for lp in params['mic']:
        d = {
            # stride-k conv:  [Cout,Cin,k] -> im2col weight [k*Cin, Cout]
            'wc': [jnp.transpose(w['w'], (2, 1, 0)).reshape(-1, w['w'].shape[0]).astype(bf16)
                   for w in lp['conv']],
            'bc': [w['b'].reshape(1, -1).astype(f32) for w in lp['conv']],
            # isometric conv: [Cout,Cin,ki] -> im2col weight [ki*Cin, Cout]
            'wi': [jnp.transpose(w['w'], (2, 1, 0)).reshape(-1, w['w'].shape[0]).astype(bf16)
                   for w in lp['iso']],
            'bi': [w['b'].reshape(1, -1).astype(f32) for w in lp['iso']],
            # transposed conv: [Cin,Cout,k] -> output-concatenated [Cin, k*Cout]
            'wt': [jnp.transpose(w['w'], (0, 2, 1)).reshape(w['w'].shape[0], -1).astype(bf16)
                   for w in lp['conv_trans']],
            'bt': [jnp.tile(w['b'], (k,)).reshape(1, -1).astype(f32)
                   for w, k in zip(lp['conv_trans'], conv_kernel)],
            'g': lp['norm']['g'].reshape(1, -1).astype(f32),
            'b': lp['norm']['b'].reshape(1, -1).astype(f32),
            # merge Conv2d: [Cout,Cin,nb,1] -> branch-concatenated [nb*Cin, Cout]
            'wm': jnp.transpose(lp['merge']['w'][..., 0], (2, 1, 0))
                     .reshape(-1, lp['merge']['w'].shape[0]).astype(bf16),
            'bm': lp['merge']['b'].reshape(1, -1).astype(f32),
            'g1': lp['norm1']['g'].reshape(1, -1).astype(f32),
            'b1': lp['norm1']['b'].reshape(1, -1).astype(f32),
            'w1': lp['conv1']['w'][:, :, 0].T.astype(bf16),
            'c1b': lp['conv1']['b'].reshape(1, -1).astype(f32),
            'w2': lp['conv2']['w'][:, :, 0].T.astype(bf16),
            'c2b': lp['conv2']['b'].reshape(1, -1).astype(f32),
            'g2': lp['norm2']['g'].reshape(1, -1).astype(f32),
            'b2': lp['norm2']['b'].reshape(1, -1).astype(f32),
        }
        out.append(d)
    # final Linear [c_out, C]  ->  lane-padded [C, CP] (CP = 128-multiple)
    C = params['proj']['w'].shape[1]
    CP = ((c_out + 127) // 128) * 128
    pw = jnp.zeros((C, CP), f32).at[:, :c_out].set(params['proj']['w'].T).astype(bf16)
    pb = jnp.zeros((1, CP), f32).at[0, :c_out].set(params['proj']['b'])
    return {'mic': out, 'proj': {'w': pw, 'b': pb}}


# ------------------------ pure-JAX reference (check) --------------------------

def _ref_ln(x, g, b):
    mu = x.mean(-1, keepdims=True)
    var = ((x - mu) ** 2).mean(-1, keepdims=True)
    return (x - mu) / jnp.sqrt(var + 1e-5) * g + b


def _ref_forward(dec, params, conv_kernel, decomp_kernel):
    for lp in params['mic']:
        B, L, C = dec.shape
        branches = []
        for i, k in enumerate(conv_kernel):
            dk = decomp_kernel[i]
            pd = (dk - 1) // 2
            xp = jnp.concatenate([jnp.repeat(dec[:, :1], pd, 1), dec,
                                  jnp.repeat(dec[:, -1:], pd, 1)], axis=1)
            ma = jnp.stack([xp[:, j:j + L] for j in range(dk)], 0).mean(0)
            s = dec - ma
            pc = k // 2
            xc = jnp.pad(s, ((0, 0), (pc, pc), (0, 0)))
            L1 = (L + 2 * pc - k) // k + 1
            xw = xc[:, :L1 * k].reshape(B, L1, k, C)
            x1 = jnp.tanh(jnp.einsum('btjc,ocj->bto', xw, lp['conv'][i]['w'])
                          + lp['conv'][i]['b'])
            ki = lp['iso'][i]['w'].shape[2]
            xcat = jnp.concatenate([jnp.zeros((B, L1 - 1, C), jnp.float32), x1], 1)
            xw2 = jnp.stack([xcat[:, j:j + L1] for j in range(ki)], axis=2)
            xi = jnp.tanh(jnp.einsum('btjc,ocj->bto', xw2, lp['iso'][i]['w'])
                          + lp['iso'][i]['b'])
            xn = _ref_ln(xi + x1, lp['norm']['g'], lp['norm']['b'])
            y = jnp.einsum('btc,coj->btjo', xn, lp['conv_trans'][i]['w'])
            y = jnp.tanh(y.reshape(B, L1 * k, C) + lp['conv_trans'][i]['b'])[:, :L]
            branches.append(_ref_ln(y + dec, lp['norm']['g'], lp['norm']['b']))
        mg = jnp.stack(branches, axis=1)
        merged = (jnp.einsum('bjtc,ocj->bto', mg, lp['merge']['w'][..., 0])
                  + lp['merge']['b'])
        y = _ref_ln(merged, lp['norm1']['g'], lp['norm1']['b'])
        y = jnp.einsum('btc,hc->bth', y, lp['conv1']['w'][:, :, 0]) + lp['conv1']['b']
        y = jnp.einsum('bth,ch->btc', y, lp['conv2']['w'][:, :, 0]) + lp['conv2']['b']
        dec = _ref_ln(merged + y, lp['norm2']['g'], lp['norm2']['b'])
    return jnp.einsum('btc,oc->bto', dec, params['proj']['w']) + params['proj']['b']


# ----------------------------------- main ------------------------------------

if __name__ == "__main__":
    B, L, F = 2, 8, 32                      # batch, seq_len, embedding_size
    conv_kernel = (2, 4)
    decomp_kernel = (3, 5)                  # odd kernels (as in MICN)
    c_out = 1
    d_layers = 1

    # isometric kernel must equal the downsampled length so the residual works
    iso_kernel = [(L + 2 * (k // 2) - k) // k + 1 for k in conv_kernel]   # [5, 3]

    key = jax.random.PRNGKey(0)
    kx, kp = jax.random.split(key)
    dec = jax.random.normal(kx, (B, L, F), jnp.float32)

    params = init_params(kp, F, conv_kernel, iso_kernel, d_layers, c_out)
    prepped = prepare_params(params, conv_kernel, c_out)   # one-time re-layout

    out = seasonal_prediction_forward(dec, prepped, conv_kernel, decomp_kernel, c_out)
    out = jax.block_until_ready(out)

    assert out.shape == (B, L, c_out)
    assert bool(jnp.all(jnp.isfinite(out)))

    ref = _ref_forward(dec, params, list(conv_kernel), list(decomp_kernel))
    err = float(jnp.max(jnp.abs(out - ref)))
    # bf16 matmul operands (f32 accumulation) -> slightly looser tolerance
    assert bool(jnp.allclose(out, ref, atol=3e-2, rtol=3e-2)), err

    print("KERNEL_OK")
</pallas_src>

<mosaic_0001>
module attributes {stable_mosaic.version = 11 : i64} {
  func.func @_micn_layer_kernel(%arg0: i32, %arg1: memref<1x8x32xf32, #tpu.memory_space<vmem>>, %arg2: memref<64x32xbf16, #tpu.memory_space<vmem>>, %arg3: memref<1x32xf32, #tpu.memory_space<vmem>>, %arg4: memref<160x32xbf16, #tpu.memory_space<vmem>>, %arg5: memref<1x32xf32, #tpu.memory_space<vmem>>, %arg6: memref<32x64xbf16, #tpu.memory_space<vmem>>, %arg7: memref<1x64xf32, #tpu.memory_space<vmem>>, %arg8: memref<128x32xbf16, #tpu.memory_space<vmem>>, %arg9: memref<1x32xf32, #tpu.memory_space<vmem>>, %arg10: memref<96x32xbf16, #tpu.memory_space<vmem>>, %arg11: memref<1x32xf32, #tpu.memory_space<vmem>>, %arg12: memref<32x128xbf16, #tpu.memory_space<vmem>>, %arg13: memref<1x128xf32, #tpu.memory_space<vmem>>, %arg14: memref<1x32xf32, #tpu.memory_space<vmem>>, %arg15: memref<1x32xf32, #tpu.memory_space<vmem>>, %arg16: memref<64x32xbf16, #tpu.memory_space<vmem>>, %arg17: memref<1x32xf32, #tpu.memory_space<vmem>>, %arg18: memref<1x32xf32, #tpu.memory_space<vmem>>, %arg19: memref<1x32xf32, #tpu.memory_space<vmem>>, %arg20: memref<32x128xbf16, #tpu.memory_space<vmem>>, %arg21: memref<1x128xf32, #tpu.memory_space<vmem>>, %arg22: memref<128x32xbf16, #tpu.memory_space<vmem>>, %arg23: memref<1x32xf32, #tpu.memory_space<vmem>>, %arg24: memref<1x32xf32, #tpu.memory_space<vmem>>, %arg25: memref<1x32xf32, #tpu.memory_space<vmem>>, %arg26: memref<32x128xbf16, #tpu.memory_space<vmem>>, %arg27: memref<1x128xf32, #tpu.memory_space<vmem>>, %arg28: memref<1x8x128xf32, #tpu.memory_space<vmem>>, %arg29: memref<10x32xf32, #tpu.memory_space<vmem>>, %arg30: memref<10x32xf32, #tpu.memory_space<vmem>>, %arg31: memref<12x32xf32, #tpu.memory_space<vmem>>, %arg32: memref<12x32xf32, #tpu.memory_space<vmem>>) attributes {dimension_semantics = [#tpu.dimension_semantics<parallel>], iteration_bounds = array<i64: 2>, scalar_prefetch = 0 : i64, scratch_operands = 4 : i64, tpu.core_type = #tpu.core_type<tc>, window_params = [{transform_indices = @transform_0, window_bounds = array<i64: 1, 8, 32>}, {pipeline_mode = #tpu.pipeline_mode<synchronous>, transform_indices = @transform_1, window_bounds = array<i64: 64, 32>}, {pipeline_mode = #tpu.pipeline_mode<synchronous>, transform_indices = @transform_2, window_bounds = array<i64: 1, 32>}, {pipeline_mode = #tpu.pipeline_mode<synchronous>, transform_indices = @transform_3, window_bounds = array<i64: 160, 32>}, {pipeline_mode = #tpu.pipeline_mode<synchronous>, transform_indices = @transform_4, window_bounds = array<i64: 1, 32>}, {pipeline_mode = #tpu.pipeline_mode<synchronous>, transform_indices = @transform_5, window_bounds = array<i64: 32, 64>}, {pipeline_mode = #tpu.pipeline_mode<synchronous>, transform_indices = @transform_6, window_bounds = array<i64: 1, 64>}, {pipeline_mode = #tpu.pipeline_mode<synchronous>, transform_indices = @transform_7, window_bounds = array<i64: 128, 32>}, {pipeline_mode = #tpu.pipeline_mode<synchronous>, transform_indices = @transform_8, window_bounds = array<i64: 1, 32>}, {pipeline_mode = #tpu.pipeline_mode<synchronous>, transform_indices = @transform_9, window_bounds = array<i64: 96, 32>}, {pipeline_mode = #tpu.pipeline_mode<synchronous>, transform_indices = @transform_10, window_bounds = array<i64: 1, 32>}, {pipeline_mode = #tpu.pipeline_mode<synchronous>, transform_indices = @transform_11, window_bounds = array<i64: 32, 128>}, {pipeline_mode = #tpu.pipeline_mode<synchronous>, transform_indices = @transform_12, window_bounds = array<i64: 1, 128>}, {pipeline_mode = #tpu.pipeline_mode<synchronous>, transform_indices = @transform_13, window_bounds = array<i64: 1, 32>}, {pipeline_mode = #tpu.pipeline_mode<synchronous>, transform_indices = @transform_14, window_bounds = array<i64: 1, 32>}, {pipeline_mode = #tpu.pipeline_mode<synchronous>, transform_indices = @transform_15, window_bounds = array<i64: 64, 32>}, {pipeline_mode = #tpu.pipeline_mode<synchronous>, transform_indices = @transform_16, window_bounds = array<i64: 1, 32>}, {pipeline_mode = #tpu.pipeline_mode<synchronous>, transform_indices = @transform_17, window_bounds = array<i64: 1, 32>}, {pipeline_mode = #tpu.pipeline_mode<synchronous>, transform_indices = @transform_18, window_bounds = array<i64: 1, 32>}, {pipeline_mode = #tpu.pipeline_mode<synchronous>, transform_indices = @transform_19, window_bounds = array<i64: 32, 128>}, {pipeline_mode = #tpu.pipeline_mode<synchronous>, transform_indices = @transform_20, window_bounds = array<i64: 1, 128>}, {pipeline_mode = #tpu.pipeline_mode<synchronous>, transform_indices = @transform_21, window_bounds = array<i64: 128, 32>}, {pipeline_mode = #tpu.pipeline_mode<synchronous>, transform_indices = @transform_22, window_bounds = array<i64: 1, 32>}, {pipeline_mode = #tpu.pipeline_mode<synchronous>, transform_indices = @transform_23, window_bounds = array<i64: 1, 32>}, {pipeline_mode = #tpu.pipeline_mode<synchronous>, transform_indices = @transform_24, window_bounds = array<i64: 1, 32>}, {pipeline_mode = #tpu.pipeline_mode<synchronous>, transform_indices = @transform_25, window_bounds = array<i64: 32, 128>}, {pipeline_mode = #tpu.pipeline_mode<synchronous>, transform_indices = @transform_26, window_bounds = array<i64: 1, 128>}, {transform_indices = @transform_27, window_bounds = array<i64: 1, 8, 128>}]} {
    %c0 = arith.constant 0 : index
    %c0_0 = arith.constant 0 : index
    %c0_1 = arith.constant 0 : index
    %0 = vector.load %arg1[%c0, %c0_0, %c0_1] : memref<1x8x32xf32, #tpu.memory_space<vmem>>, vector<1x8x32xf32>
    %1 = vector.shape_cast %0 : vector<1x8x32xf32> to vector<8x32xf32>
    %2 = vector.extract_strided_slice %1 {offsets = [0, 0], sizes = [1, 32], strides = [1, 1]} : vector<8x32xf32> to vector<1x32xf32>
    %3 = vector.extract_strided_slice %1 {offsets = [7, 0], sizes = [1, 32], strides = [1, 1]} : vector<8x32xf32> to vector<1x32xf32>
    %4 = tpu.concatenate %2, %1, %3 in 0 : vector<1x32xf32>, vector<8x32xf32>, vector<1x32xf32> -> vector<10x32xf32>
    %5 = vector.extract_strided_slice %4 {offsets = [0, 0], sizes = [8, 32], strides = [1, 1]} : vector<10x32xf32> to vector<8x32xf32>
    %6 = vector.extract_strided_slice %4 {offsets = [1, 0], sizes = [8, 32], strides = [1, 1]} : vector<10x32xf32> to vector<8x32xf32>
    %7 = arith.addf %5, %6 : vector<8x32xf32>
    %8 = vector.extract_strided_slice %4 {offsets = [2, 0], sizes = [8, 32], strides = [1, 1]} : vector<10x32xf32> to vector<8x32xf32>
    %9 = arith.addf %7, %8 : vector<8x32xf32>
    %cst = arith.constant 0.333333343 : f32
    %10 = vector.broadcast %cst : f32 to vector<8x32xf32>
    %11 = arith.mulf %9, %10 : vector<8x32xf32>
    %12 = arith.subf %1, %11 : vector<8x32xf32>
    %cst_2 = arith.constant 0.000000e+00 : f32
    %13 = vector.broadcast %cst_2 : f32 to vector<1x32xf32>
    %cst_3 = arith.constant 0.000000e+00 : f32
    %14 = vector.broadcast %cst_3 : f32 to vector<1x32xf32>
    %15 = tpu.concatenate %13, %12, %14 in 0 : vector<1x32xf32>, vector<8x32xf32>, vector<1x32xf32> -> vector<10x32xf32>
    %c0_4 = arith.constant 0 : index
    %c0_5 = arith.constant 0 : index
    %16 = vector.load %arg29[%c0_4, %c0_5] : memref<10x32xf32, #tpu.memory_space<vmem>>, vector<10x32xf32>
    tpu.vector_store %arg29[%c0_4, %c0_5], %15 {strides = array<i32>} : memref<10x32xf32, #tpu.memory_space<vmem>>, vector<10x32xf32>,
    %c0_6 = arith.constant 0 : index
    %c0_7 = arith.constant 0 : index
    %17 = tpu.strided_load %arg29[%c0_6, %c0_7] {strides = array<i32: 2, 1>} : memref<10x32xf32, #tpu.memory_space<vmem>>, vector<5x32xf32>
    %c1 = arith.constant 1 : index
    %c0_8 = arith.constant 0 : index
    %18 = tpu.strided_load %arg29[%c1, %c0_8] {strides = array<i32: 2, 1>} : memref<10x32xf32, #tpu.memory_space<vmem>>, vector<5x32xf32>
    %19 = tpu.concatenate %17, %18 in 1 : vector<5x32xf32>, vector<5x32xf32> -> vector<5x64xf32>
    %20 = arith.truncf %19 : vector<5x64xf32> to vector<5x64xbf16>
    %c0_9 = arith.constant 0 : index
    %c0_10 = arith.constant 0 : index
    %21 = vector.load %arg2[%c0_9, %c0_10] : memref<64x32xbf16, #tpu.memory_space<vmem>>, vector<64x32xbf16>
    %cst_11 = arith.constant dense<0.000000e+00> : vector<5x32xf32>
    %22 = tpu.matmul %20, %21, %cst_11 {dimension_numbers = #tpu.dot_dimension_numbers<[1], [0], [0], [1], [0, 0, 1, 1], [], []>} : vector<5x64xbf16>, vector<64x32xbf16>, vector<5x32xf32> -> vector<5x32xf32>
    %c0_12 = arith.constant 0 : index
    %c0_13 = arith.constant 0 : index
    %23 = vector.load %arg3[%c0_12, %c0_13] : memref<1x32xf32, #tpu.memory_space<vmem>>, vector<1x32xf32>
    %24 = vector.broadcast %23 : vector<1x32xf32> to vector<5x32xf32>
    %25 = arith.addf %22, %24 : vector<5x32xf32>
    %26 = math.tanh %25 : vector<5x32xf32>
    %cst_14 = arith.constant 0.000000e+00 : f32
    %27 = vector.broadcast %cst_14 : f32 to vector<4x32xf32>
    %28 = tpu.concatenate %27, %26 in 0 : vector<4x32xf32>, vector<5x32xf32> -> vector<9x32xf32>
    %29 = vector.extract_strided_slice %28 {offsets = [0, 0], sizes = [5, 32], strides = [1, 1]} : vector<9x32xf32> to vector<5x32xf32>
    %30 = vector.extract_strided_slice %28 {offsets = [1, 0], sizes = [5, 32], strides = [1, 1]} : vector<9x32xf32> to vector<5x32xf32>
    %31 = vector.extract_strided_slice %28 {offsets = [2, 0], sizes = [5, 32], strides = [1, 1]} : vector<9x32xf32> to vector<5x32xf32>
    %32 = vector.extract_strided_slice %28 {offsets = [3, 0], sizes = [5, 32], strides = [1, 1]} : vector<9x32xf32> to vector<5x32xf32>
    %33 = vector.extract_strided_slice %28 {offsets = [4, 0], sizes = [5, 32], strides = [1, 1]} : vector<9x32xf32> to vector<5x32xf32>
    %34 = tpu.concatenate %29, %30, %31, %32, %33 in 1 : vector<5x32xf32>, vector<5x32xf32>, vector<5x32xf32>, vector<5x32xf32>, vector<5x32xf32> -> vector<5x160xf32>
    %35 = arith.truncf %34 : vector<5x160xf32> to vector<5x160xbf16>
    %c0_15 = arith.constant 0 : index
    %c0_16 = arith.constant 0 : index
    %36 = vector.load %arg4[%c0_15, %c0_16] : memref<160x32xbf16, #tpu.memory_space<vmem>>, vector<160x32xbf16>
    %cst_17 = arith.constant dense<0.000000e+00> : vector<5x32xf32>
    %37 = tpu.matmul %35, %36, %cst_17 {dimension_numbers = #tpu.dot_dimension_numbers<[1], [0], [0], [1], [0, 0, 1, 1], [], []>} : vector<5x160xbf16>, vector<160x32xbf16>, vector<5x32xf32> -> vector<5x32xf32>
    %c0_18 = arith.constant 0 : index
    %c0_19 = arith.constant 0 : index
    %38 = vector.load %arg5[%c0_18, %c0_19] : memref<1x32xf32, #tpu.memory_space<vmem>>, vector<1x32xf32>
    %39 = vector.broadcast %38 : vector<1x32xf32> to vector<5x32xf32>
    %40 = arith.addf %37, %39 : vector<5x32xf32>
    %41 = math.tanh %40 : vector<5x32xf32>
    %42 = arith.addf %41, %26 : vector<5x32xf32>
    %cst_20 = arith.constant dense<0.000000e+00> : vector<5xf32>
    %43 = vector.multi_reduction <add>, %42, %cst_20 [1] : vector<5x32xf32> to vector<5xf32>
    %44 = vector.shape_cast %43 : vector<5xf32> to vector<5x1xf32>
    %cst_21 = arith.constant 3.200000e+01 : f32
    %45 = vector.broadcast %cst_21 : f32 to vector<5x1xf32>
    %46 = arith.divf %44, %45 : vector<5x1xf32>
    %47 = vector.broadcast %46 : vector<5x1xf32> to vector<5x32xf32>
    %48 = arith.subf %42, %47 : vector<5x32xf32>
    %49 = arith.mulf %48, %48 : vector<5x32xf32>
    %cst_22 = arith.constant dense<0.000000e+00> : vector<5xf32>
    %50 = vector.multi_reduction <add>, %49, %cst_22 [1] : vector<5x32xf32> to vector<5xf32>
    %51 = vector.shape_cast %50 : vector<5xf32> to vector<5x1xf32>
    %cst_23 = arith.constant 3.200000e+01 : f32
    %52 = vector.broadcast %cst_23 : f32 to vector<5x1xf32>
    %53 = arith.divf %51, %52 : vector<5x1xf32>
    %54 = vector.broadcast %46 : vector<5x1xf32> to vector<5x32xf32>
    %55 = arith.subf %42, %54 : vector<5x32xf32>
    %cst_24 = arith.constant 9.99999974E-6 : f32
    %56 = vector.broadcast %cst_24 : f32 to vector<5x1xf32>
    %57 = arith.addf %53, %56 : vector<5x1xf32>
    %58 = math.rsqrt %57 : vector<5x1xf32>
    %59 = vector.broadcast %58 : vector<5x1xf32> to vector<5x32xf32>
    %60 = arith.mulf %55, %59 : vector<5x32xf32>
    %c0_25 = arith.constant 0 : index
    %c0_26 = arith.constant 0 : index
    %61 = vector.load %arg14[%c0_25, %c0_26] : memref<1x32xf32, #tpu.memory_space<vmem>>, vector<1x32xf32>
    %62 = vector.broadcast %61 : vector<1x32xf32> to vector<5x32xf32>
    %63 = arith.mulf %60, %62 : vector<5x32xf32>
    %c0_27 = arith.constant 0 : index
    %c0_28 = arith.constant 0 : index
    %64 = vector.load %arg15[%c0_27, %c0_28] : memref<1x32xf32, #tpu.memory_space<vmem>>, vector<1x32xf32>
    %65 = vector.broadcast %64 : vector<1x32xf32> to vector<5x32xf32>
    %66 = arith.addf %63, %65 : vector<5x32xf32>
    %67 = arith.truncf %66 : vector<5x32xf32> to vector<5x32xbf16>
    %c0_29 = arith.constant 0 : index
    %c0_30 = arith.constant 0 : index
    %68 = vector.load %arg6[%c0_29, %c0_30] : memref<32x64xbf16, #tpu.memory_space<vmem>>, vector<32x64xbf16>
    %cst_31 = arith.constant dense<0.000000e+00> : vector<5x64xf32>
    %69 = tpu.matmul %67, %68, %cst_31 {dimension_numbers = #tpu.dot_dimension_numbers<[1], [0], [0], [1], [0, 0, 1, 1], [], []>} : vector<5x32xbf16>, vector<32x64xbf16>, vector<5x64xf32> -> vector<5x64xf32>
    %c0_32 = arith.constant 0 : index
    %c0_33 = arith.constant 0 : index
    %70 = vector.load %arg7[%c0_32, %c0_33] : memref<1x64xf32, #tpu.memory_space<vmem>>, vector<1x64xf32>
    %71 = vector.broadcast %70 : vector<1x64xf32> to vector<5x64xf32>
    %72 = arith.addf %69, %71 : vector<5x64xf32>
    %73 = math.tanh %72 : vector<5x64xf32>
    %74 = vector.extract_strided_slice %73 {offsets = [0, 0], sizes = [5, 32], strides = [1, 1]} : vector<5x64xf32> to vector<5x32xf32>
    %c0_34 = arith.constant 0 : index
    %c0_35 = arith.constant 0 : index
    %75 = tpu.strided_load %arg30[%c0_34, %c0_35] {strides = array<i32: 2, 1>} : memref<10x32xf32, #tpu.memory_space<vmem>>, vector<5x32xf32>
    tpu.strided_store %arg30[%c0_34, %c0_35], %74 {strides = array<i32: 2, 1>} : memref<10x32xf32, #tpu.memory_space<vmem>>, vector<5x32xf32>
    %76 = vector.extract_strided_slice %73 {offsets = [0, 32], sizes = [5, 32], strides = [1, 1]} : vector<5x64xf32> to vector<5x32xf32>
    %c1_36 = arith.constant 1 : index
    %c0_37 = arith.constant 0 : index
    %77 = tpu.strided_load %arg30[%c1_36, %c0_37] {strides = array<i32: 2, 1>} : memref<10x32xf32, #tpu.memory_space<vmem>>, vector<5x32xf32>
    tpu.strided_store %arg30[%c1_36, %c0_37], %76 {strides = array<i32: 2, 1>} : memref<10x32xf32, #tpu.memory_space<vmem>>, vector<5x32xf32>
    %c0_38 = arith.constant 0 : index
    %c0_39 = arith.constant 0 : index
    %78 = vector.load %arg30[%c0_38, %c0_39] : memref<10x32xf32, #tpu.memory_space<vmem>>, vector<8x32xf32>
    %79 = arith.addf %78, %1 : vector<8x32xf32>
    %cst_40 = arith.constant dense<0.000000e+00> : vector<8xf32>
    %80 = vector.multi_reduction <add>, %79, %cst_40 [1] : vector<8x32xf32> to vector<8xf32>
    %81 = vector.shape_cast %80 : vector<8xf32> to vector<8x1xf32>
    %cst_41 = arith.constant 3.200000e+01 : f32
    %82 = vector.broadcast %cst_41 : f32 to vector<8x1xf32>
    %83 = arith.divf %81, %82 : vector<8x1xf32>
    %84 = vector.broadcast %83 : vector<8x1xf32> to vector<8x32xf32>
    %85 = arith.subf %79, %84 : vector<8x32xf32>
    %86 = arith.mulf %85, %85 : vector<8x32xf32>
    %cst_42 = arith.constant dense<0.000000e+00> : vector<8xf32>
    %87 = vector.multi_reduction <add>, %86, %cst_42 [1] : vector<8x32xf32> to vector<8xf32>
    %88 = vector.shape_cast %87 : vector<8xf32> to vector<8x1xf32>
    %cst_43 = arith.constant 3.200000e+01 : f32
    %89 = vector.broadcast %cst_43 : f32 to vector<8x1xf32>
    %90 = arith.divf %88, %89 : vector<8x1xf32>
    %91 = vector.broadcast %83 : vector<8x1xf32> to vector<8x32xf32>
    %92 = arith.subf %79, %91 : vector<8x32xf32>
    %cst_44 = arith.constant 9.99999974E-6 : f32
    %93 = vector.broadcast %cst_44 : f32 to vector<8x1xf32>
    %94 = arith.addf %90, %93 : vector<8x1xf32>
    %95 = math.rsqrt %94 : vector<8x1xf32>
    %96 = vector.broadcast %95 : vector<8x1xf32> to vector<8x32xf32>
    %97 = arith.mulf %92, %96 : vector<8x32xf32>
    %c0_45 = arith.constant 0 : index
    %c0_46 = arith.constant 0 : index
    %98 = vector.load %arg14[%c0_45, %c0_46] : memref<1x32xf32, #tpu.memory_space<vmem>>, vector<1x32xf32>
    %99 = vector.broadcast %98 : vector<1x32xf32> to vector<8x32xf32>
    %100 = arith.mulf %97, %99 : vector<8x32xf32>
    %c0_47 = arith.constant 0 : index
    %c0_48 = arith.constant 0 : index
    %101 = vector.load %arg15[%c0_47, %c0_48] : memref<1x32xf32, #tpu.memory_space<vmem>>, vector<1x32xf32>
    %102 = vector.broadcast %101 : vector<1x32xf32> to vector<8x32xf32>
    %103 = arith.addf %100, %102 : vector<8x32xf32>
    %104 = vector.extract_strided_slice %1 {offsets = [0, 0], sizes = [1, 32], strides = [1, 1]} : vector<8x32xf32> to vector<1x32xf32>
    %105 = vector.shape_cast %104 : vector<1x32xf32> to vector<1x32xf32>
    %106 = vector.broadcast %105 : vector<1x32xf32> to vector<2x32xf32>
    %107 = vector.extract_strided_slice %1 {offsets = [7, 0], sizes = [1, 32], strides = [1, 1]} : vector<8x32xf32> to vector<1x32xf32>
    %108 = vector.shape_cast %107 : vector<1x32xf32> to vector<1x32xf32>
    %109 = vector.broadcast %108 : vector<1x32xf32> to vector<2x32xf32>
    %110 = tpu.concatenate %106, %1, %109 in 0 : vector<2x32xf32>, vector<8x32xf32>, vector<2x32xf32> -> vector<12x32xf32>
    %111 = vector.extract_strided_slice %110 {offsets = [0, 0], sizes = [8, 32], strides = [1, 1]} : vector<12x32xf32> to vector<8x32xf32>
    %112 = vector.extract_strided_slice %110 {offsets = [1, 0], sizes = [8, 32], strides = [1, 1]} : vector<12x32xf32> to vector<8x32xf32>
    %113 = arith.addf %111, %112 : vector<8x32xf32>
    %114 = vector.extract_strided_slice %110 {offsets = [2, 0], sizes = [8, 32], strides = [1, 1]} : vector<12x32xf32> to vector<8x32xf32>
    %115 = arith.addf %113, %114 : vector<8x32xf32>
    %116 = vector.extract_strided_slice %110 {offsets = [3, 0], sizes = [8, 32], strides = [1, 1]} : vector<12x32xf32> to vector<8x32xf32>
    %117 = arith.addf %115, %116 : vector<8x32xf32>
    %118 = vector.extract_strided_slice %110 {offsets = [4, 0], sizes = [8, 32], strides = [1, 1]} : vector<12x32xf32> to vector<8x32xf32>
    %119 = arith.addf %117, %118 : vector<8x32xf32>
    %cst_49 = arith.constant 2.000000e-01 : f32
    %120 = vector.broadcast %cst_49 : f32 to vector<8x32xf32>
    %121 = arith.mulf %119, %120 : vector<8x32xf32>
    %122 = arith.subf %1, %121 : vector<8x32xf32>
    %cst_50 = arith.constant 0.000000e+00 : f32
    %123 = vector.broadcast %cst_50 : f32 to vector<2x32xf32>
    %cst_51 = arith.constant 0.000000e+00 : f32
    %124 = vector.broadcast %cst_51 : f32 to vector<2x32xf32>
    %125 = tpu.concatenate %123, %122, %124 in 0 : vector<2x32xf32>, vector<8x32xf32>, vector<2x32xf32> -> vector<12x32xf32>
    %c0_52 = arith.constant 0 : index
    %c0_53 = arith.constant 0 : index
    %126 = vector.load %arg31[%c0_52, %c0_53] : memref<12x32xf32, #tpu.memory_space<vmem>>, vector<12x32xf32>
    tpu.vector_store %arg31[%c0_52, %c0_53], %125 {strides = array<i32>} : memref<12x32xf32, #tpu.memory_space<vmem>>, vector<12x32xf32>,
    %c0_54 = arith.constant 0 : index
    %c0_55 = arith.constant 0 : index
    %127 = tpu.strided_load %arg31[%c0_54, %c0_55] {strides = array<i32: 4, 1>} : memref<12x32xf32, #tpu.memory_space<vmem>>, vector<3x32xf32>
    %c1_56 = arith.constant 1 : index
    %c0_57 = arith.constant 0 : index
    %128 = tpu.strided_load %arg31[%c1_56, %c0_57] {strides = array<i32: 4, 1>} : memref<12x32xf32, #tpu.memory_space<vmem>>, vector<3x32xf32>
    %c2 = arith.constant 2 : index
    %c0_58 = arith.constant 0 : index
    %129 = tpu.strided_load %arg31[%c2, %c0_58] {strides = array<i32: 4, 1>} : memref<12x32xf32, #tpu.memory_space<vmem>>, vector<3x32xf32>
    %c3 = arith.constant 3 : index
    %c0_59 = arith.constant 0 : index
    %130 = tpu.strided_load %arg31[%c3, %c0_59] {strides = array<i32: 4, 1>} : memref<12x32xf32, #tpu.memory_space<vmem>>, vector<3x32xf32>
    %131 = tpu.concatenate %127, %128, %129, %130 in 1 : vector<3x32xf32>, vector<3x32xf32>, vector<3x32xf32>, vector<3x32xf32> -> vector<3x128xf32>
    %132 = arith.truncf %131 : vector<3x128xf32> to vector<3x128xbf16>
    %c0_60 = arith.constant 0 : index
    %c0_61 = arith.constant 0 : index
    %133 = vector.load %arg8[%c0_60, %c0_61] : memref<128x32xbf16, #tpu.memory_space<vmem>>, vector<128x32xbf16>
    %cst_62 = arith.constant dense<0.000000e+00> : vector<3x32xf32>
    %134 = tpu.matmul %132, %133, %cst_62 {dimension_numbers = #tpu.dot_dimension_numbers<[1], [0], [0], [1], [0, 0, 1, 1], [], []>} : vector<3x128xbf16>, vector<128x32xbf16>, vector<3x32xf32> -> vector<3x32xf32>
    %c0_63 = arith.constant 0 : index
    %c0_64 = arith.constant 0 : index
    %135 = vector.load %arg9[%c0_63, %c0_64] : memref<1x32xf32, #tpu.memory_space<vmem>>, vector<1x32xf32>
    %136 = vector.broadcast %135 : vector<1x32xf32> to vector<3x32xf32>
    %137 = arith.addf %134, %136 : vector<3x32xf32>
    %138 = math.tanh %137 : vector<3x32xf32>
    %cst_65 = arith.constant 0.000000e+00 : f32
    %139 = vector.broadcast %cst_65 : f32 to vector<2x32xf32>
    %140 = tpu.concatenate %139, %138 in 0 : vector<2x32xf32>, vector<3x32xf32> -> vector<5x32xf32>
    %141 = vector.extract_strided_slice %140 {offsets = [0, 0], sizes = [3, 32], strides = [1, 1]} : vector<5x32xf32> to vector<3x32xf32>
    %142 = vector.extract_strided_slice %140 {offsets = [1, 0], sizes = [3, 32], strides = [1, 1]} : vector<5x32xf32> to vector<3x32xf32>
    %143 = vector.extract_strided_slice %140 {offsets = [2, 0], sizes = [3, 32], strides = [1, 1]} : vector<5x32xf32> to vector<3x32xf32>
    %144 = tpu.concatenate %141, %142, %143 in 1 : vector<3x32xf32>, vector<3x32xf32>, vector<3x32xf32> -> vector<3x96xf32>
    %145 = arith.truncf %144 : vector<3x96xf32> to vector<3x96xbf16>
    %c0_66 = arith.constant 0 : index
    %c0_67 = arith.constant 0 : index
    %146 = vector.load %arg10[%c0_66, %c0_67] : memref<96x32xbf16, #tpu.memory_space<vmem>>, vector<96x32xbf16>
    %cst_68 = arith.constant dense<0.000000e+00> : vector<3x32xf32>
    %147 = tpu.matmul %145, %146, %cst_68 {dimension_numbers = #tpu.dot_dimension_numbers<[1], [0], [0], [1], [0, 0, 1, 1], [], []>} : vector<3x96xbf16>, vector<96x32xbf16>, vector<3x32xf32> -> vector<3x32xf32>
    %c0_69 = arith.constant 0 : index
    %c0_70 = arith.constant 0 : index
    %148 = vector.load %arg11[%c0_69, %c0_70] : memref<1x32xf32, #tpu.memory_space<vmem>>, vector<1x32xf32>
    %149 = vector.broadcast %148 : vector<1x32xf32> to vector<3x32xf32>
    %150 = arith.addf %147, %149 : vector<3x32xf32>
    %151 = math.tanh %150 : vector<3x32xf32>
    %152 = arith.addf %151, %138 : vector<3x32xf32>
    %cst_71 = arith.constant dense<0.000000e+00> : vector<3xf32>
    %153 = vector.multi_reduction <add>, %152, %cst_71 [1] : vector<3x32xf32> to vector<3xf32>
    %154 = vector.shape_cast %153 : vector<3xf32> to vector<3x1xf32>
    %cst_72 = arith.constant 3.200000e+01 : f32
    %155 = vector.broadcast %cst_72 : f32 to vector<3x1xf32>
    %156 = arith.divf %154, %155 : vector<3x1xf32>
    %157 = vector.broadcast %156 : vector<3x1xf32> to vector<3x32xf32>
    %158 = arith.subf %152, %157 : vector<3x32xf32>
    %159 = arith.mulf %158, %158 : vector<3x32xf32>
    %cst_73 = arith.constant dense<0.000000e+00> : vector<3xf32>
    %160 = vector.multi_reduction <add>, %159, %cst_73 [1] : vector<3x32xf32> to vector<3xf32>
    %161 = vector.shape_cast %160 : vector<3xf32> to vector<3x1xf32>
    %cst_74 = arith.constant 3.200000e+01 : f32
    %162 = vector.broadcast %cst_74 : f32 to vector<3x1xf32>
    %163 = arith.divf %161, %162 : vector<3x1xf32>
    %164 = vector.broadcast %156 : vector<3x1xf32> to vector<3x32xf32>
    %165 = arith.subf %152, %164 : vector<3x32xf32>
    %cst_75 = arith.constant 9.99999974E-6 : f32
    %166 = vector.broadcast %cst_75 : f32 to vector<3x1xf32>
    %167 = arith.addf %163, %166 : vector<3x1xf32>
    %168 = math.rsqrt %167 : vector<3x1xf32>
    %169 = vector.broadcast %168 : vector<3x1xf32> to vector<3x32xf32>
    %170 = arith.mulf %165, %169 : vector<3x32xf32>
    %c0_76 = arith.constant 0 : index
    %c0_77 = arith.constant 0 : index
    %171 = vector.load %arg14[%c0_76, %c0_77] : memref<1x32xf32, #tpu.memory_space<vmem>>, vector<1x32xf32>
    %172 = vector.broadcast %171 : vector<1x32xf32> to vector<3x32xf32>
    %173 = arith.mulf %170, %172 : vector<3x32xf32>
    %c0_78 = arith.constant 0 : index
    %c0_79 = arith.constant 0 : index
    %174 = vector.load %arg15[%c0_78, %c0_79] : memref<1x32xf32, #tpu.memory_space<vmem>>, vector<1x32xf32>
    %175 = vector.broadcast %174 : vector<1x32xf32> to vector<3x32xf32>
    %176 = arith.addf %173, %175 : vector<3x32xf32>
    %177 = arith.truncf %176 : vector<3x32xf32> to vector<3x32xbf16>
    %c0_80 = arith.constant 0 : index
    %c0_81 = arith.constant 0 : index
    %178 = vector.load %arg12[%c0_80, %c0_81] : memref<32x128xbf16, #tpu.memory_space<vmem>>, vector<32x128xbf16>
    %cst_82 = arith.constant dense<0.000000e+00> : vector<3x128xf32>
    %179 = tpu.matmul %177, %178, %cst_82 {dimension_numbers = #tpu.dot_dimension_numbers<[1], [0], [0], [1], [0, 0, 1, 1], [], []>} : vector<3x32xbf16>, vector<32x128xbf16>, vector<3x128xf32> -> vector<3x128xf32>
    %c0_83 = arith.constant 0 : index
    %c0_84 = arith.constant 0 : index
    %180 = vector.load %arg13[%c0_83, %c0_84] : memref<1x128xf32, #tpu.memory_space<vmem>>, vector<1x128xf32>
    %181 = vector.broadcast %180 : vector<1x128xf32> to vector<3x128xf32>
    %182 = arith.addf %179, %181 : vector<3x128xf32>
    %183 = math.tanh %182 : vector<3x128xf32>
    %184 = vector.extract_strided_slice %183 {offsets = [0, 0], sizes = [3, 32], strides = [1, 1]} : vector<3x128xf32> to vector<3x32xf32>
    %c0_85 = arith.constant 0 : index
    %c0_86 = arith.constant 0 : index
    %185 = tpu.strided_load %arg32[%c0_85, %c0_86] {strides = array<i32: 4, 1>} : memref<12x32xf32, #tpu.memory_space<vmem>>, vector<3x32xf32>
    tpu.strided_store %arg32[%c0_85, %c0_86], %184 {strides = array<i32: 4, 1>} : memref<12x32xf32, #tpu.memory_space<vmem>>, vector<3x32xf32>
    %186 = vector.extract_strided_slice %183 {offsets = [0, 32], sizes = [3, 32], strides = [1, 1]} : vector<3x128xf32> to vector<3x32xf32>
    %c1_87 = arith.constant 1 : index
    %c0_88 = arith.constant 0 : index
    %187 = tpu.strided_load %arg32[%c1_87, %c0_88] {strides = array<i32: 4, 1>} : memref<12x32xf32, #tpu.memory_space<vmem>>, vector<3x32xf32>
    tpu.strided_store %arg32[%c1_87, %c0_88], %186 {strides = array<i32: 4, 1>} : memref<12x32xf32, #tpu.memory_space<vmem>>, vector<3x32xf32>
    %188 = vector.extract_strided_slice %183 {offsets = [0, 64], sizes = [3, 32], strides = [1, 1]} : vector<3x128xf32> to vector<3x32xf32>
    %c2_89 = arith.constant 2 : index
    %c0_90 = arith.constant 0 : index
    %189 = tpu.strided_load %arg32[%c2_89, %c0_90] {strides = array<i32: 4, 1>} : memref<12x32xf32, #tpu.memory_space<vmem>>, vector<3x32xf32>
    tpu.strided_store %arg32[%c2_89, %c0_90], %188 {strides = array<i32: 4, 1>} : memref<12x32xf32, #tpu.memory_space<vmem>>, vector<3x32xf32>
    %190 = vector.extract_strided_slice %183 {offsets = [0, 96], sizes = [3, 32], strides = [1, 1]} : vector<3x128xf32> to vector<3x32xf32>
    %c3_91 = arith.constant 3 : index
    %c0_92 = arith.constant 0 : index
    %191 = tpu.strided_load %arg32[%c3_91, %c0_92] {strides = array<i32: 4, 1>} : memref<12x32xf32, #tpu.memory_space<vmem>>, vector<3x32xf32>
    tpu.strided_store %arg32[%c3_91, %c0_92], %190 {strides = array<i32: 4, 1>} : memref<12x32xf32, #tpu.memory_space<vmem>>, vector<3x32xf32>
    %c0_93 = arith.constant 0 : index
    %c0_94 = arith.constant 0 : index
    %192 = vector.load %arg32[%c0_93, %c0_94] : memref<12x32xf32, #tpu.memory_space<vmem>>, vector<8x32xf32>
    %193 = arith.addf %192, %1 : vector<8x32xf32>
    %cst_95 = arith.constant dense<0.000000e+00> : vector<8xf32>
    %194 = vector.multi_reduction <add>, %193, %cst_95 [1] : vector<8x32xf32> to vector<8xf32>
    %195 = vector.shape_cast %194 : vector<8xf32> to vector<8x1xf32>
    %cst_96 = arith.constant 3.200000e+01 : f32
    %196 = vector.broadcast %cst_96 : f32 to vector<8x1xf32>
    %197 = arith.divf %195, %196 : vector<8x1xf32>
    %198 = vector.broadcast %197 : vector<8x1xf32> to vector<8x32xf32>
    %199 = arith.subf %193, %198 : vector<8x32xf32>
    %200 = arith.mulf %199, %199 : vector<8x32xf32>
    %cst_97 = arith.constant dense<0.000000e+00> : vector<8xf32>
    %201 = vector.multi_reduction <add>, %200, %cst_97 [1] : vector<8x32xf32> to vector<8xf32>
    %202 = vector.shape_cast %201 : vector<8xf32> to vector<8x1xf32>
    %cst_98 = arith.constant 3.200000e+01 : f32
    %203 = vector.broadcast %cst_98 : f32 to vector<8x1xf32>
    %204 = arith.divf %202, %203 : vector<8x1xf32>
    %205 = vector.broadcast %197 : vector<8x1xf32> to vector<8x32xf32>
    %206 = arith.subf %193, %205 : vector<8x32xf32>
    %cst_99 = arith.constant 9.99999974E-6 : f32
    %207 = vector.broadcast %cst_99 : f32 to vector<8x1xf32>
    %208 = arith.addf %204, %207 : vector<8x1xf32>
    %209 = math.rsqrt %208 : vector<8x1xf32>
    %210 = vector.broadcast %209 : vector<8x1xf32> to vector<8x32xf32>
    %211 = arith.mulf %206, %210 : vector<8x32xf32>
    %c0_100 = arith.constant 0 : index
    %c0_101 = arith.constant 0 : index
    %212 = vector.load %arg14[%c0_100, %c0_101] : memref<1x32xf32, #tpu.memory_space<vmem>>, vector<1x32xf32>
    %213 = vector.broadcast %212 : vector<1x32xf32> to vector<8x32xf32>
    %214 = arith.mulf %211, %213 : vector<8x32xf32>
    %c0_102 = arith.constant 0 : index
    %c0_103 = arith.constant 0 : index
    %215 = vector.load %arg15[%c0_102, %c0_103] : memref<1x32xf32, #tpu.memory_space<vmem>>, vector<1x32xf32>
    %216 = vector.broadcast %215 : vector<1x32xf32> to vector<8x32xf32>
    %217 = arith.addf %214, %216 : vector<8x32xf32>
    %218 = tpu.concatenate %103, %217 in 1 : vector<8x32xf32>, vector<8x32xf32> -> vector<8x64xf32>
    %219 = arith.truncf %218 : vector<8x64xf32> to vector<8x64xbf16>
    %c0_104 = arith.constant 0 : index
    %c0_105 = arith.constant 0 : index
    %220 = vector.load %arg16[%c0_104, %c0_105] : memref<64x32xbf16, #tpu.memory_space<vmem>>, vector<64x32xbf16>
    %cst_106 = arith.constant dense<0.000000e+00> : vector<8x32xf32>
    %221 = tpu.matmul %219, %220, %cst_106 {dimension_numbers = #tpu.dot_dimension_numbers<[1], [0], [0], [1], [0, 0, 1, 1], [], []>} : vector<8x64xbf16>, vector<64x32xbf16>, vector<8x32xf32> -> vector<8x32xf32>
    %c0_107 = arith.constant 0 : index
    %c0_108 = arith.constant 0 : index
    %222 = vector.load %arg17[%c0_107, %c0_108] : memref<1x32xf32, #tpu.memory_space<vmem>>, vector<1x32xf32>
    %223 = vector.broadcast %222 : vector<1x32xf32> to vector<8x32xf32>
    %224 = arith.addf %221, %223 : vector<8x32xf32>
    %cst_109 = arith.constant dense<0.000000e+00> : vector<8xf32>
    %225 = vector.multi_reduction <add>, %224, %cst_109 [1] : vector<8x32xf32> to vector<8xf32>
    %226 = vector.shape_cast %225 : vector<8xf32> to vector<8x1xf32>
    %cst_110 = arith.constant 3.200000e+01 : f32
    %227 = vector.broadcast %cst_110 : f32 to vector<8x1xf32>
    %228 = arith.divf %226, %227 : vector<8x1xf32>
    %229 = vector.broadcast %228 : vector<8x1xf32> to vector<8x32xf32>
    %230 = arith.subf %224, %229 : vector<8x32xf32>
    %231 = arith.mulf %230, %230 : vector<8x32xf32>
    %cst_111 = arith.constant dense<0.000000e+00> : vector<8xf32>
    %232 = vector.multi_reduction <add>, %231, %cst_111 [1] : vector<8x32xf32> to vector<8xf32>
    %233 = vector.shape_cast %232 : vector<8xf32> to vector<8x1xf32>
    %cst_112 = arith.constant 3.200000e+01 : f32
    %234 = vector.broadcast %cst_112 : f32 to vector<8x1xf32>
    %235 = arith.divf %233, %234 : vector<8x1xf32>
    %236 = vector.broadcast %228 : vector<8x1xf32> to vector<8x32xf32>
    %237 = arith.subf %224, %236 : vector<8x32xf32>
    %cst_113 = arith.constant 9.99999974E-6 : f32
    %238 = vector.broadcast %cst_113 : f32 to vector<8x1xf32>
    %239 = arith.addf %235, %238 : vector<8x1xf32>
    %240 = math.rsqrt %239 : vector<8x1xf32>
    %241 = vector.broadcast %240 : vector<8x1xf32> to vector<8x32xf32>
    %242 = arith.mulf %237, %241 : vector<8x32xf32>
    %c0_114 = arith.constant 0 : index
    %c0_115 = arith.constant 0 : index
    %243 = vector.load %arg18[%c0_114, %c0_115] : memref<1x32xf32, #tpu.memory_space<vmem>>, vector<1x32xf32>
    %244 = vector.broadcast %243 : vector<1x32xf32> to vector<8x32xf32>
    %245 = arith.mulf %242, %244 : vector<8x32xf32>
    %c0_116 = arith.constant 0 : index
    %c0_117 = arith.constant 0 : index
    %246 = vector.load %arg19[%c0_116, %c0_117] : memref<1x32xf32, #tpu.memory_space<vmem>>, vector<1x32xf32>
    %247 = vector.broadcast %246 : vector<1x32xf32> to vector<8x32xf32>
    %248 = arith.addf %245, %247 : vector<8x32xf32>
    %249 = arith.truncf %248 : vector<8x32xf32> to vector<8x32xbf16>
    %c0_118 = arith.constant 0 : index
    %c0_119 = arith.constant 0 : index
    %250 = vector.load %arg20[%c0_118, %c0_119] : memref<32x128xbf16, #tpu.memory_space<vmem>>, vector<32x128xbf16>
    %cst_120 = arith.constant dense<0.000000e+00> : vector<8x128xf32>
    %251 = tpu.matmul %249, %250, %cst_120 {dimension_numbers = #tpu.dot_dimension_numbers<[1], [0], [0], [1], [0, 0, 1, 1], [], []>} : vector<8x32xbf16>, vector<32x128xbf16>, vector<8x128xf32> -> vector<8x128xf32>
    %c0_121 = arith.constant 0 : index
    %c0_122 = arith.constant 0 : index
    %252 = vector.load %arg21[%c0_121, %c0_122] : memref<1x128xf32, #tpu.memory_space<vmem>>, vector<1x128xf32>
    %253 = vector.broadcast %252 : vector<1x128xf32> to vector<8x128xf32>
    %254 = arith.addf %251, %253 : vector<8x128xf32>
    %255 = arith.truncf %254 : vector<8x128xf32> to vector<8x128xbf16>
    %c0_123 = arith.constant 0 : index
    %c0_124 = arith.constant 0 : index
    %256 = vector.load %arg22[%c0_123, %c0_124] : memref<128x32xbf16, #tpu.memory_space<vmem>>, vector<128x32xbf16>
    %cst_125 = arith.constant dense<0.000000e+00> : vector<8x32xf32>
    %257 = tpu.matmul %255, %256, %cst_125 {dimension_numbers = #tpu.dot_dimension_numbers<[1], [0], [0], [1], [0, 0, 1, 1], [], []>} : vector<8x128xbf16>, vector<128x32xbf16>, vector<8x32xf32> -> vector<8x32xf32>
    %c0_126 = arith.constant 0 : index
    %c0_127 = arith.constant 0 : index
    %258 = vector.load %arg23[%c0_126, %c0_127] : memref<1x32xf32, #tpu.memory_space<vmem>>, vector<1x32xf32>
    %259 = vector.broadcast %258 : vector<1x32xf32> to vector<8x32xf32>
    %260 = arith.addf %257, %259 : vector<8x32xf32>
    %261 = arith.addf %224, %260 : vector<8x32xf32>
    %cst_128 = arith.constant dense<0.000000e+00> : vector<8xf32>
    %262 = vector.multi_reduction <add>, %261, %cst_128 [1] : vector<8x32xf32> to vector<8xf32>
    %263 = vector.shape_cast %262 : vector<8xf32> to vector<8x1xf32>
    %cst_129 = arith.constant 3.200000e+01 : f32
    %264 = vector.broadcast %cst_129 : f32 to vector<8x1xf32>
    %265 = arith.divf %263, %264 : vector<8x1xf32>
    %266 = vector.broadcast %265 : vector<8x1xf32> to vector<8x32xf32>
    %267 = arith.subf %261, %266 : vector<8x32xf32>
    %268 = arith.mulf %267, %267 : vector<8x32xf32>
    %cst_130 = arith.constant dense<0.000000e+00> : vector<8xf32>
    %269 = vector.multi_reduction <add>, %268, %cst_130 [1] : vector<8x32xf32> to vector<8xf32>
    %270 = vector.shape_cast %269 : vector<8xf32> to vector<8x1xf32>
    %cst_131 = arith.constant 3.200000e+01 : f32
    %271 = vector.broadcast %cst_131 : f32 to vector<8x1xf32>
    %272 = arith.divf %270, %271 : vector<8x1xf32>
    %273 = vector.broadcast %265 : vector<8x1xf32> to vector<8x32xf32>
    %274 = arith.subf %261, %273 : vector<8x32xf32>
    %cst_132 = arith.constant 9.99999974E-6 : f32
    %275 = vector.broadcast %cst_132 : f32 to vector<8x1xf32>
    %276 = arith.addf %272, %275 : vector<8x1xf32>
    %277 = math.rsqrt %276 : vector<8x1xf32>
    %278 = vector.broadcast %277 : vector<8x1xf32> to vector<8x32xf32>
    %279 = arith.mulf %274, %278 : vector<8x32xf32>
    %c0_133 = arith.constant 0 : index
    %c0_134 = arith.constant 0 : index
    %280 = vector.load %arg24[%c0_133, %c0_134] : memref<1x32xf32, #tpu.memory_space<vmem>>, vector<1x32xf32>
    %281 = vector.broadcast %280 : vector<1x32xf32> to vector<8x32xf32>
    %282 = arith.mulf %279, %281 : vector<8x32xf32>
    %c0_135 = arith.constant 0 : index
    %c0_136 = arith.constant 0 : index
    %283 = vector.load %arg25[%c0_135, %c0_136] : memref<1x32xf32, #tpu.memory_space<vmem>>, vector<1x32xf32>
    %284 = vector.broadcast %283 : vector<1x32xf32> to vector<8x32xf32>
    %285 = arith.addf %282, %284 : vector<8x32xf32>
    %286 = arith.truncf %285 : vector<8x32xf32> to vector<8x32xbf16>
    %c0_137 = arith.constant 0 : index
    %c0_138 = arith.constant 0 : index
    %287 = vector.load %arg26[%c0_137, %c0_138] : memref<32x128xbf16, #tpu.memory_space<vmem>>, vector<32x128xbf16>
    %cst_139 = arith.constant dense<0.000000e+00> : vector<8x128xf32>
    %288 = tpu.matmul %286, %287, %cst_139 {dimension_numbers = #tpu.dot_dimension_numbers<[1], [0], [0], [1], [0, 0, 1, 1], [], []>} : vector<8x32xbf16>, vector<32x128xbf16>, vector<8x128xf32> -> vector<8x128xf32>
    %c0_140 = arith.constant 0 : index
    %c0_141 = arith.constant 0 : index
    %289 = vector.load %arg27[%c0_140, %c0_141] : memref<1x128xf32, #tpu.memory_space<vmem>>, vector<1x128xf32>
    %290 = vector.broadcast %289 : vector<1x128xf32> to vector<8x128xf32>
    %291 = arith.addf %288, %290 : vector<8x128xf32>
    %c0_142 = arith.constant 0 : index
    %c0_143 = arith.constant 0 : index
    %c0_144 = arith.constant 0 : index
    %292 = vector.load %arg28[%c0_142, %c0_143, %c0_144] : memref<1x8x128xf32, #tpu.memory_space<vmem>>, vector<1x8x128xf32>
    %293 = vector.shape_cast %292 : vector<1x8x128xf32> to vector<8x128xf32>
    %294 = vector.shape_cast %291 : vector<8x128xf32> to vector<1x8x128xf32>
    tpu.vector_store %arg28[%c0_142, %c0_143, %c0_144], %294 {strides = array<i32>} : memref<1x8x128xf32, #tpu.memory_space<vmem>>, vector<1x8x128xf32>,
    return
  }
  func.func @transform_0(%arg0: i32) -> (i32, i32, i32) {
    %c0_i32 = arith.constant 0 : i32
    %c0_i32_0 = arith.constant 0 : i32
    %c0_i32_1 = arith.constant 0 : i32
    return %arg0, %c0_i32, %c0_i32_0 : i32, i32, i32
  }
  func.func @transform_1(%arg0: i32) -> (i32, i32) {
    %c0_i32 = arith.constant 0 : i32
    %c0_i32_0 = arith.constant 0 : i32
    %c0_i32_1 = arith.constant 0 : i32
    return %c0_i32, %c0_i32_0 : i32, i32
  }
  func.func @transform_2(%arg0: i32) -> (i32, i32) {
    %c0_i32 = arith.constant 0 : i32
    %c0_i32_0 = arith.constant 0 : i32
    %c0_i32_1 = arith.constant 0 : i32
    return %c0_i32, %c0_i32_0 : i32, i32
  }
  func.func @transform_3(%arg0: i32) -> (i32, i32) {
    %c0_i32 = arith.constant 0 : i32
    %c0_i32_0 = arith.constant 0 : i32
    %c0_i32_1 = arith.constant 0 : i32
    return %c0_i32, %c0_i32_0 : i32, i32
  }
  func.func @transform_4(%arg0: i32) -> (i32, i32) {
    %c0_i32 = arith.constant 0 : i32
    %c0_i32_0 = arith.constant 0 : i32
    %c0_i32_1 = arith.constant 0 : i32
    return %c0_i32, %c0_i32_0 : i32, i32
  }
  func.func @transform_5(%arg0: i32) -> (i32, i32) {
    %c0_i32 = arith.constant 0 : i32
    %c0_i32_0 = arith.constant 0 : i32
    %c0_i32_1 = arith.constant 0 : i32
    return %c0_i32, %c0_i32_0 : i32, i32
  }
  func.func @transform_6(%arg0: i32) -> (i32, i32) {
    %c0_i32 = arith.constant 0 : i32
    %c0_i32_0 = arith.constant 0 : i32
    %c0_i32_1 = arith.constant 0 : i32
    return %c0_i32, %c0_i32_0 : i32, i32
  }
  func.func @transform_7(%arg0: i32) -> (i32, i32) {
    %c0_i32 = arith.constant 0 : i32
    %c0_i32_0 = arith.constant 0 : i32
    %c0_i32_1 = arith.constant 0 : i32
    return %c0_i32, %c0_i32_0 : i32, i32
  }
  func.func @transform_8(%arg0: i32) -> (i32, i32) {
    %c0_i32 = arith.constant 0 : i32
    %c0_i32_0 = arith.constant 0 : i32
    %c0_i32_1 = arith.constant 0 : i32
    return %c0_i32, %c0_i32_0 : i32, i32
  }
  func.func @transform_9(%arg0: i32) -> (i32, i32) {
    %c0_i32 = arith.constant 0 : i32
    %c0_i32_0 = arith.constant 0 : i32
    %c0_i32_1 = arith.constant 0 : i32
    return %c0_i32, %c0_i32_0 : i32, i32
  }
  func.func @transform_10(%arg0: i32) -> (i32, i32) {
    %c0_i32 = arith.constant 0 : i32
    %c0_i32_0 = arith.constant 0 : i32
    %c0_i32_1 = arith.constant 0 : i32
    return %c0_i32, %c0_i32_0 : i32, i32
  }
  func.func @transform_11(%arg0: i32) -> (i32, i32) {
    %c0_i32 = arith.constant 0 : i32
    %c0_i32_0 = arith.constant 0 : i32
    %c0_i32_1 = arith.constant 0 : i32
    return %c0_i32, %c0_i32_0 : i32, i32
  }
  func.func @transform_12(%arg0: i32) -> (i32, i32) {
    %c0_i32 = arith.constant 0 : i32
    %c0_i32_0 = arith.constant 0 : i32
    %c0_i32_1 = arith.constant 0 : i32
    return %c0_i32, %c0_i32_0 : i32, i32
  }
  func.func @transform_13(%arg0: i32) -> (i32, i32) {
    %c0_i32 = arith.constant 0 : i32
    %c0_i32_0 = arith.constant 0 : i32
    %c0_i32_1 = arith.constant 0 : i32
    return %c0_i32, %c0_i32_0 : i32, i32
  }
  func.func @transform_14(%arg0: i32) -> (i32, i32) {
    %c0_i32 = arith.constant 0 : i32
    %c0_i32_0 = arith.constant 0 : i32
    %c0_i32_1 = arith.constant 0 : i32
    return %c0_i32, %c0_i32_0 : i32, i32
  }
  func.func @transform_15(%arg0: i32) -> (i32, i32) {
    %c0_i32 = arith.constant 0 : i32
    %c0_i32_0 = arith.constant 0 : i32
    %c0_i32_1 = arith.constant 0 : i32
    return %c0_i32, %c0_i32_0 : i32, i32
  }
  func.func @transform_16(%arg0: i32) -> (i32, i32) {
    %c0_i32 = arith.constant 0 : i32
    %c0_i32_0 = arith.constant 0 : i32
    %c0_i32_1 = arith.constant 0 : i32
    return %c0_i32, %c0_i32_0 : i32, i32
  }
  func.func @transform_17(%arg0: i32) -> (i32, i32) {
    %c0_i32 = arith.constant 0 : i32
    %c0_i32_0 = arith.constant 0 : i32
    %c0_i32_1 = arith.constant 0 : i32
    return %c0_i32, %c0_i32_0 : i32, i32
  }
  func.func @transform_18(%arg0: i32) -> (i32, i32) {
    %c0_i32 = arith.constant 0 : i32
    %c0_i32_0 = arith.constant 0 : i32
    %c0_i32_1 = arith.constant 0 : i32
    return %c0_i32, %c0_i32_0 : i32, i32
  }
  func.func @transform_19(%arg0: i32) -> (i32, i32) {
    %c0_i32 = arith.constant 0 : i32
    %c0_i32_0 = arith.constant 0 : i32
    %c0_i32_1 = arith.constant 0 : i32
    return %c0_i32, %c0_i32_0 : i32, i32
  }
  func.func @transform_20(%arg0: i32) -> (i32, i32) {
    %c0_i32 = arith.constant 0 : i32
    %c0_i32_0 = arith.constant 0 : i32
    %c0_i32_1 = arith.constant 0 : i32
    return %c0_i32, %c0_i32_0 : i32, i32
  }
  func.func @transform_21(%arg0: i32) -> (i32, i32) {
    %c0_i32 = arith.constant 0 : i32
    %c0_i32_0 = arith.constant 0 : i32
    %c0_i32_1 = arith.constant 0 : i32
    return %c0_i32, %c0_i32_0 : i32, i32
  }
  func.func @transform_22(%arg0: i32) -> (i32, i32) {
    %c0_i32 = arith.constant 0 : i32
    %c0_i32_0 = arith.constant 0 : i32
    %c0_i32_1 = arith.constant 0 : i32
    return %c0_i32, %c0_i32_0 : i32, i32
  }
  func.func @transform_23(%arg0: i32) -> (i32, i32) {
    %c0_i32 = arith.constant 0 : i32
    %c0_i32_0 = arith.constant 0 : i32
    %c0_i32_1 = arith.constant 0 : i32
    return %c0_i32, %c0_i32_0 : i32, i32
  }
  func.func @transform_24(%arg0: i32) -> (i32, i32) {
    %c0_i32 = arith.constant 0 : i32
    %c0_i32_0 = arith.constant 0 : i32
    %c0_i32_1 = arith.constant 0 : i32
    return %c0_i32, %c0_i32_0 : i32, i32
  }
  func.func @transform_25(%arg0: i32) -> (i32, i32) {
    %c0_i32 = arith.constant 0 : i32
    %c0_i32_0 = arith.constant 0 : i32
    %c0_i32_1 = arith.constant 0 : i32
    return %c0_i32, %c0_i32_0 : i32, i32
  }
  func.func @transform_26(%arg0: i32) -> (i32, i32) {
    %c0_i32 = arith.constant 0 : i32
    %c0_i32_0 = arith.constant 0 : i32
    %c0_i32_1 = arith.constant 0 : i32
    return %c0_i32, %c0_i32_0 : i32, i32
  }
  func.func @transform_27(%arg0: i32) -> (i32, i32, i32) {
    %c0_i32 = arith.constant 0 : i32
    %c0_i32_0 = arith.constant 0 : i32
    %c0_i32_1 = arith.constant 0 : i32
    return %arg0, %c0_i32, %c0_i32_0 : i32, i32, i32
  }
}

</mosaic_0001>

<bundles_post_ra>
// kernel: seasonal_prediction_forward.1
= control target key start
LH: loop header
LB: loop body
LE: loop exit
PB: predicated region body
PF: predicated region fallthrough
CT: control target
= control target key end

     0   :  { %s2975_s0 = inlined_call_operand.vmem [shape: f32[2,8,32], index: 0, kind: input, shape index: {}]   ;;  %s2976_s1 = inlined_call_operand.vmem [shape: bf16[64,32], index: 1, kind: input, shape index: {}]   ;;  %s2977_s2 = inlined_call_operand.vmem [shape: f32[1,32], index: 2, kind: input, shape index: {}]   ;;  %s2978_s3 = inlined_call_operand.vmem [shape: bf16[160,32], index: 3, kind: input, shape index: {}]   ;;  %s2979_s4 = inlined_call_operand.vmem [shape: f32[1,32], index: 4, kind: input, shape index: {}]   ;;  %s2980_s5 = inlined_call_operand.vmem [shape: bf16[32,64], index: 5, kind: input, shape index: {}]   ;;  %s2981_s6 = inlined_call_operand.vmem [shape: f32[1,64], index: 6, kind: input, shape index: {}]   ;;  %s2982_s7 = inlined_call_operand.vmem [shape: bf16[128,32], index: 7, kind: input, shape index: {}]   ;;  %s2983_s8 = inlined_call_operand.vmem [shape: f32[1,32], index: 8, kind: input, shape index: {}]   ;;  %s2984_s9 = inlined_call_operand.vmem [shape: bf16[96,32], index: 9, kind: input, shape index: {}]   ;;  %s2985_s10 = inlined_call_operand.vmem [shape: f32[1,32], index: 10, kind: input, shape index: {}]   ;;  %s2986_s11 = inlined_call_operand.vmem [shape: bf16[32,128], index: 11, kind: input, shape index: {}]   ;;  %s2987_s12 = inlined_call_operand.vmem [shape: f32[1,128], index: 12, kind: input, shape index: {}]   ;;  %s2988_s13 = inlined_call_operand.vmem [shape: f32[1,32], index: 13, kind: input, shape index: {}]   ;;  %s2989_s14 = inlined_call_operand.vmem [shape: f32[1,32], index: 14, kind: input, shape index: {}]   ;;  %s2990_s15 = inlined_call_operand.vmem [shape: bf16[64,32], index: 15, kind: input, shape index: {}]   ;;  %s2991_s16 = inlined_call_operand.vmem [shape: f32[1,32], index: 16, kind: input, shape index: {}]   ;;  %s2992_s17 = inlined_call_operand.vmem [shape: f32[1,32], index: 17, kind: input, shape index: {}]   ;;  %s2993_s18 = inlined_call_operand.vmem [shape: f32[1,32], index: 18, kind: input, shape index: {}]   ;;  %s2994_s19 = inlined_call_operand.vmem [shape: bf16[32,128], index: 19, kind: input, shape index: {}]   ;;  %s2995_s20 = inlined_call_operand.vmem [shape: f32[1,128], index: 20, kind: input, shape index: {}]   ;;  %s2996_s21 = inlined_call_operand.vmem [shape: bf16[128,32], index: 21, kind: input, shape index: {}]   ;;  %s2997_s22 = inlined_call_operand.vmem [shape: f32[1,32], index: 22, kind: input, shape index: {}]   ;;  %s2998_s23 = inlined_call_operand.vmem [shape: f32[1,32], index: 23, kind: input, shape index: {}]   ;;  %s2999_s24 = inlined_call_operand.vmem [shape: f32[1,32], index: 24, kind: input, shape index: {}]   ;;  %s3000_s25 = inlined_call_operand.vmem [shape: bf16[32,128], index: 25, kind: input, shape index: {}]   ;;  %s3001_s26 = inlined_call_operand.vmem [shape: f32[1,128], index: 26, kind: input, shape index: {}]   ;;  %s3002_s27 = inlined_call_operand.vmem [shape: f32[2,8,128], index: 27, kind: output, shape index: {}]  }
   0x1   :  { %3018 = sst [smem:[#allocation6_spill]] %s2975_s0 }
   0x2   :  { %3019 = sst [smem:[#allocation7_spill]] %s2976_s1 }
   0x3   :  { %3020 = sst [smem:[#allocation8_spill]] %s2977_s2 }
   0x4   :  { %3021 = sst [smem:[#allocation9_spill]] %s2978_s3 }
   0x5   :  { %3022 = sst [smem:[#allocation10_spill]] %s2979_s4 }
   0x6   :  { %3023 = sst [smem:[#allocation11_spill]] %s2980_s5 }
   0x7   :  { %3024 = sst [smem:[#allocation12_spill]] %s2981_s6 }
   0x8   :  { %3025 = sst [smem:[#allocation13_spill]] %s2982_s7  ;;  %s2613_s7 = smov 0  }
   0x9   :  { %3026 = sst [smem:[#allocation14_spill]] %s2983_s8 }
   0xa   :  { %3027 = sst [smem:[#allocation15_spill]] %s2984_s9 }
   0xb   :  { %3028 = sst [smem:[#allocation16_spill]] %s2985_s10 }
   0xc   :  { %3029 = sst [smem:[#allocation17_spill]] %s2986_s11 }
   0xd LB: > { %s2127_s4 = sadd.s32 4294967295, %s2465_s7   ;;  %p2131_p0 = scmp.ge.s32.totalorder %s2465_s7, 1  ;;  %s2465_s7 = sphi %s2613_s7, %s37_s7  }
   0xe   : > { %p736_p1 = scmp.lt.s32.totalorder %s2465_s7, 3 }
  0x10   : > { %p737_p2 = pnand %p2131_p0, %p736_p1 }
  0x11   : > { %p806_p3 = scmp.lt.s32.totalorder (!%p737_p2), %s2127_s4, 1  ;;  %s3030_s9 = sld [smem:[#allocation7_spill]] (!%p737_p2) }
  0x12   : > { %740 = sbr.rel (%p737_p2) target bundleno = 4087 (0xff7), region = 128  ;;  %s3031_s1 = sld [smem:[#allocation6_spill]] (!%p737_p2) }
  0x13   : > { %s3012_s30 = smov (!%p737_p2), 32   ;;  %s3032_s10 = sld [smem:[#allocation9_spill]] (!%p737_p2) }
  0x14   : > { %s3033_s28 = sld [smem:[#allocation8_spill]] (!%p737_p2)  ;;  %s3014_s11 = smov (!%p737_p2), 64  }
  0x15   : > { %s3010_s2 = smov (!%p737_p2), 96   ;;  %s3037_s0 = sld [smem:[#allocation15_spill]] (!%p737_p2) }
  0x16   : > { %s3039_s3 = sld [smem:[#allocation14_spill]] (!%p737_p2)  ;;  %s3040_s29 = smov (!%p737_p2), 64  }
  0x17   : > { %s3047_s4 = smov (!%p806_p3, %s2127_s4), 1  ;;  %v2467_v0 = vmov 0.0   ;;  %v2387_v1 = vld [vmem:[%s3030_s9 + $0x18] sm:$0xff]   ;;  %vm821_vm0 = vcmask 1040384   ;;  %vm826_vm1 = vcmask 1046528   ;;  %v2388_v2 = vld [vmem:[%s3030_s9 + $0x10] sm:$0xff]   ;;  %v1239_v28 = vlaneseq }
  0x18   : > { %2261 = vmatprep.subr.bf16.mxu0 %v2467_v0  ;;  %s3009_s5 = sshll.u32 %s3047_s4, 3  ;;  %vm832_vm2 = vcmask 1045504   ;;  %v2389_v4 = vld [vmem:[%s3030_s9 + $0x8] sm:$0xff]   ;;  %v2390_v18 = vld [vmem:[%s3030_s9] sm:$0xff]   ;;  %vm845_vm3 = vcmask 261120   ;;  %vm847_vm4 = vcmask 254976  }
  0x19   : > { %2262 = vmatpush3.bf16.msra.mxu0 %v2387_v1  ;;  %s809_s6 = scalar_lea.vmem %s3031_s1, %s3009_s5  ;;  %vm2468_vm5 = vmmov 0   ;;  %vm897_vm6 = vcmask 523264   ;;  %v1240_v29 = vshrl.u32 %v1239_v28, 7  ;;  %vm1247_vm7 = vcmask 1041408   ;;  %v2391_v34 = vld [vmem:[%s3032_s10 + $0x38] sm:$0xff]   ;;  %v2392_v38 = vld [vmem:[%s3032_s10 + $0x30] sm:$0xff]  }
  0x1a   : > { %2263 = vmatprep.subr.bf16.mxu0 %v2467_v0  ;;  %v2637_v3 = vld [vmem:[%s809_s6] sm:$0xff]  ;;  %2269 = vmatprep.mubr.msk.bf16.mxu0 %vm2468_vm5, %v2467_v0  ;;  %v2470_v35 = vmov 0   ;;  %vm1262_vm8 = vcmask 1044480   ;;  %v2393_v50 = vld [vmem:[%s3032_s10 + $0x28] sm:$0xff]   ;;  %vm945_vm9 = vcmask 1043456   ;;  %v2395_v58 = vld [vmem:[%s3032_s10 + $0x18] sm:$0xff]  }
  0x1b   : > { %v817_v5 = vrot.slane %v2637_v3, 7  ;;  %v819_v6 = vrot.slane %v2637_v3, 6  ;;  %v1241_v30 = vsub.s32 0, %v1240_v29  ;;  %v1245_v31 = vsub.s32 7, %v1240_v29  ;;  %1060 = vmatprep.subr.bf16.mxu1 %v2470_v35  ;;  %v2394_v55 = vld [vmem:[%s3032_s10 + $0x20] sm:$0xff]   ;;  %v2396_v61 = vld [vmem:[%s3032_s10 + $0x10] sm:$0xff]  }
  0x1c   : > { %1061 = vmatpush1.bf16.msra.mxu1 %v2391_v34  ;;  %vm1281_vm10 = vcmask 257024   ;;  %v2397_v1 = vld [vmem:[%s3032_s10 + $0x8] sm:$0xff]   ;;  %vm966_vm11 = vcmask 785408   ;;  %vm1102_vm12 = vcmask 258048   ;;  %s3035_s1 = sld [smem:[#allocation11_spill]]  ;;  %s3041_s6 = smov 32  }
  0x1d   : > { %2264 = vmatpush3.bf16.msra.mxu0 %v2388_v2  ;;  %v822_v7 = vsel %vm821_vm0, %v2637_v3, %v817_v5  ;;  %v823_v8 = vsel %vm821_vm0, %v817_v5, %v819_v6  ;;  %v1242_v32 = vrot.slane %v2637_v3, %v1241_v30  ;;  %v1246_v33 = vrot.slane %v2637_v3, %v1245_v31  ;;  %v2398_v2 = vld [vmem:[%s3032_s10] sm:$0xff]   ;;  %s3036_s5 = sld [smem:[#allocation13_spill]]  ;;  %s3044_s8 = smov 96  }
  0x1e   : > { %2265 = vmatprep.subr.bf16.mxu0 %v2467_v0  ;;  %v827_v9 = vrot.slane %v822_v7, 1  ;;  %v828_v10 = vrot.slane %v823_v8, 1  ;;  %v833_v11 = vrot.slane %v822_v7, 2  ;;  %v834_v12 = vrot.slane %v823_v8, 2  ;;  %1062 = vmatprep.subr.bf16.mxu1 %v2470_v35 }
  0x1f   : > { %v1248_v36 = vsel %vm1247_vm7, %v1242_v32, %v819_v6  ;;  %v1249_v37 = vsel %vm1247_vm7, %v819_v6, %v1246_v33  ;;  %vm1534_vm13 = vcmask 256000  }
  0x20   : > { %v829_v13 = vsel %vm826_vm1, %v827_v9, %v828_v10  ;;  %v835_v14 = vsel %vm832_vm2, %v833_v11, %v834_v12  ;;  %v1252_v39 = vrot.slane %v1248_v36, 1  ;;  %v1253_v40 = vrot.slane %v1249_v37, 1  ;;  %1063 = vmatpush1.bf16.msra.mxu1 %v2392_v38  ;;  %v2399_v10 = vld [vmem:[%s3032_s10 + $0x48] sm:$0xff]   ;;  %v2400_v11 = vld [vmem:[%s3032_s10 + $0x40] sm:$0xff]  }
  0x21   : > { %2266 = vmatpush3.bf16.msra.mxu0 %v2389_v4  ;;  %v831_v15 = vadd.f32 %v829_v13, %v822_v7  ;;  %v1257_v41 = vrot.slane %v1248_v36, 2  ;;  %v1258_v42 = vrot.slane %v1249_v37, 2  ;;  %v1263_v43 = vrot.slane %v1248_v36, 3  ;;  %1064 = vmatprep.subr.bf16.mxu1 %v2470_v35  ;;  %v2134_v4 = vld [vmem:[%s3033_s28] ss:$0 sm:$0xff]  ;;  %s3034_s28 = sld [smem:[#allocation10_spill]] }
  0x22   : > { %2267 = vmatprep.subr.bf16.mxu0 %v2467_v0  ;;  %v1264_v44 = vrot.slane %v1249_v37, 3  ;;  %v1254_v45 = vsel %vm826_vm1, %v1252_v39, %v1253_v40  ;;  %v1268_v47 = vrot.slane %v1248_v36, 4  ;;  %v1269_v48 = vrot.slane %v1249_v37, 4 }
  0x23   : > { %v837_v16 = vadd.f32 %v835_v14, %v831_v15  ;;  %v1259_v46 = vsel %vm832_vm2, %v1257_v41, %v1258_v42  ;;  %v1256_v49 = vadd.f32 %v1254_v45, %v1248_v36 }
  0x24   : > { %v1265_v51 = vsel %vm1262_vm8, %v1263_v43, %v1264_v44  ;;  %v1270_v53 = vsel %vm945_vm9, %v1268_v47, %v1269_v48  ;;  %1065 = vmatpush1.bf16.msra.mxu1 %v2393_v50  ;;  %v2402_v47 = vld [vmem:[%s3035_s1] sm:$0xff]  }
  0x25   : > { %v838_v17 = vmul.f32 0.33333334, %v837_v16  ;;  %2268 = vmatpush3.bf16.msra.mxu0 %v2390_v18  ;;  %v1261_v52 = vadd.f32 %v1259_v46, %v1256_v49  ;;  %1066 = vmatprep.subr.bf16.mxu1 %v2470_v35  ;;  %v2401_v46 = vld [vmem:[%s3035_s1 + $0x8] sm:$0xff]  }
  0x26   : > { %2273 = vmatprep.subr.bf16.mxu0 %v2467_v0 }
  0x27   : > { %v839_v19 = vsub.f32 %v2637_v3, %v838_v17  ;;  %v1267_v54 = vadd.f32 %v1265_v51, %v1261_v52  ;;  %v2140_v29 = vld [vmem:[%s3034_s28] ss:$0 sm:$0xff]  ;;  %s3043_s28 = sld [smem:[#allocation17_spill]] }
  0x28   : > { %1067 = vmatpush1.bf16.msra.mxu1 %v2394_v55  ;;  %v2739_v52 = vld [vmem:[%s2988_s13] ss:$0 sm:$0xff] }
  0x29   : > { %v841_v20 = vrot.slane %v839_v19, 7  ;;  %v1272_v56 = vadd.f32 %v1270_v53, %v1267_v54  ;;  %1068 = vmatprep.subr.bf16.mxu1 %v2470_v35  ;;  %v2744_v54 = vld [vmem:[%s2989_s14] ss:$0 sm:$0xff] }
  0x2b   : > { %v843_v21 = vsel %vm821_vm0, 0.0, %v841_v20  ;;  %v844_v22 = vsel %vm821_vm0, %v841_v20, 0.0  ;;  %v1273_v57 = vmul.f32 0.2, %v1272_v56 }
  0x2c   : > { %846 = vst.msk [vmem:[#allocation2] sm:$0xff] %vm845_vm3, %v843_v21  ;;  %1069 = vmatpush1.bf16.msra.mxu1 %v2395_v58 }
  0x2d   : > { %848 = vst.msk [vmem:[#allocation2 + $0x8] sm:$0x3] %vm847_vm4, %v844_v22  ;;  %v1274_v59 = vsub.f32 %v2637_v3, %v1273_v57  ;;  %1070 = vmatprep.subr.bf16.mxu1 %v2470_v35  ;;  %v2403_v57 = vld [vmem:[%s3036_s5 + $0x38] sm:$0xff]  }
  0x2f   : > { %v1276_v60 = vrot.slane %v1274_v59, 6  ;;  %v2404_v59 = vld [vmem:[%s3036_s5 + $0x30] sm:$0xff]  }
  0x30   : > { %1071 = vmatpush1.bf16.msra.mxu1 %v2396_v61  ;;  %v2406_v61 = vld [vmem:[%s3036_s5 + $0x20] sm:$0xff]  }
  0x31   : > { %v1278_v62 = vsel %vm1247_vm7, 0.0, %v1276_v60  ;;  %v1279_v63 = vsel %vm1247_vm7, %v1276_v60, 0.0  ;;  %1072 = vmatprep.subr.bf16.mxu1 %v2470_v35  ;;  %v2405_v60 = vld [vmem:[%s3036_s5 + $0x28] sm:$0xff]  }
  0x32   : > { %1280 = vst.msk [vmem:[#allocation4] sm:$0xff] %vm845_vm3, %v1278_v62  ;;  %v2407_v62 = vld [vmem:[%s3036_s5 + $0x18] sm:$0xff]  }
  0x33   : > { %1282 = vst.msk [vmem:[#allocation4 + $0x8] sm:$0xf] %vm1281_vm10, %v1279_v63  ;;  %v2408_v63 = vld [vmem:[%s3036_s5 + $0x10] sm:$0xff]  }
  0x34   : > { %v851_v23 = vld [vmem:[#allocation2 + $0x1] ss:$2 sm:$0x1f]  ;;  %v849_v24 = vld [vmem:[#allocation2] ss:$2 sm:$0x1f]  ;;  %1073 = vmatpush1.bf16.msra.mxu1 %v2397_v1 }
  0x35   : > { %853 = vrot.lane.b32.xlu0 %v851_v23, %s3012_s30  ;;  %1074 = vmatprep.subr.bf16.mxu1 %v2470_v35 }
  0x38   : > { %1075 = vmatpush1.bf16.msra.mxu1 %v2398_v2 }
  0x39   : > { %1088 = vmatprep.subr.bf16.mxu1 %v2470_v35 }
  0x3a   : > { %v1285_v38 = vld [vmem:[#allocation4 + $0x1] ss:$4 sm:$0x7]  ;;  %v1289_v39 = vld [vmem:[#allocation4 + $0x3] ss:$4 sm:$0x7] }
  0x3b   : > { %v1287_v45 = vld [vmem:[#allocation4 + $0x2] ss:$4 sm:$0x7]  ;;  %v1283_v1 = vld [vmem:[#allocation4] ss:$4 sm:$0x7] }
  0x3c   : > { %1089 = vmatpush2.bf16.msra.mxu1 %v2399_v10 }
  0x3d   : > { %1090 = vmatprep.subr.bf16.mxu1 %v2470_v35 }
  0x40   : > { %1091 = vmatpush2.bf16.msra.mxu1 %v2400_v11 }
  0x41   : > { %2301 = vmatprep.subr.bf16.mxu1 %v2467_v0 }
  0xa7   : > { %v854_v25 = vpop.permute.xlu0 %853 }
  0xa8   : > { %v856_v26 = vsel %vm845_vm3, %v849_v24, %v854_v25 }
  0xa9   : > { %v857_v27 = vpack.c.bf16 %v856_v26, %v856_v26 }
  0xab   : > { %2270 = vmatmul.mubr.msk.bf16.vlgmr.msra.gmra.mxu0 %vm897_vm6, %v857_v27 }
  0xac   : > { %2277 = vmatprep.mubr.msk.bf16.mxu0 %vm2468_vm5, %v2467_v0  ;;  %2274 = vmatpush3.bf16.msra.mxu0 %v2401_v46 }
  0xad   : > { %2275 = vmatprep.subr.bf16.mxu0 %v2467_v0 }
  0xb0   : > { %2276 = vmatpush3.bf16.msra.mxu0 %v2402_v47 }
  0xb1   : > { %2281 = vmatprep.subr.bf16.mxu0 %v2467_v0 }
 0x16b   : > { %v935_v5 = vpop.f32.mrf.mxu0 }
 0x16c   : > { %v936_v6 = vadd.f32 %v2134_v4, %v935_v5  ;;  %v2409_v5 = vld [vmem:[%s3036_s5 + $0x8] sm:$0xff]  }
 0x16d   : > { %v2271_v7 = vpop.f32.mrf.mxu0 }
 0x16e   : > { %2435 = vtanh.f32 %v936_v6 }
 0x16f   : > { %v938_v8 = vpop.f32.mrf.mxu0 }
 0x171   : > { %v2272_v9 = vpop.f32.mrf.mxu0 }
 0x172   : > { %v2410_v9 = vld [vmem:[%s3036_s5] sm:$0xff]  }
 0x17b   : > { %v2436_v12 = vpop.eup %2435 }
 0x17c   : > { %v943_v13 = vrot.slane %v2436_v12, 4 }
 0x17e   : > { %v946_v14 = vsel %vm945_vm9, 0.0, %v943_v13  ;;  %v961_v15 = vrot.slane %v943_v13, 4  ;;  %v2412_v13 = vld [vmem:[%s3037_s0 + $0x20] sm:$0xff]  }
 0x17f   : > { %v952_v16 = vrot.slane %v946_v14, 2  ;;  %v948_v17 = vrot.slane %v946_v14, 1  ;;  %v960_v18 = vrot.slane %v946_v14, 4  ;;  %v956_v21 = vrot.slane %v946_v14, 3 }
 0x181   : > { %953 = vrot.lane.b32.xlu1 %v952_v16, %s3014_s11  ;;  %949 = vrot.lane.b32.xlu0 %v948_v17, %s3012_s30  ;;  %v962_v19 = vsel %vm945_vm9, %v960_v18, %v961_v15  ;;  %v2414_v15 = vld [vmem:[%s3037_s0 + $0x10] sm:$0xff]   ;;  %v2415_v16 = vld [vmem:[%s3037_s0 + $0x8] sm:$0xff]  }
 0x182   : > { %v969_v20 = vpack.c.bf16 %v962_v19, %v962_v19 }
 0x184   : > { %2151 = vmatprep.mubr.msk.bf16.mxu1 %vm845_vm3, %v969_v20 }
 0x185   : > { %957 = vrot.lane.b32.xlu1 %v956_v21, %s3010_s2 }
 0x1f3   : > { %v954_v22 = vpop.permute.xlu1 %953  ;;  %v950_v23 = vpop.permute.xlu0 %949 }
 0x1f4   : > { %v964_v24 = vsel %vm845_vm3, %v946_v14, %v950_v23  ;;  %v2413_v14 = vld [vmem:[%s3037_s0 + $0x18] sm:$0xff]  }
 0x1f5   : > { %v965_v26 = vsel %vm897_vm6, %v964_v24, %v954_v22  ;;  %v2160_v24 = vld [vmem:[%s3039_s3] ss:$0 sm:$0xff] }
 0x1f7   : > { %v958_v25 = vpop.permute.xlu1 %957 }
 0x1f8   : > { %v967_v27 = vsel %vm966_vm11, %v965_v26, %v958_v25 }
 0x1f9   : > { %v968_v28 = vpack.c.bf16 %v967_v27, %v967_v27 }
 0x1fb   : > { %1093 = vmatmul.mubr.bf16.vlgmr.msra.gmra.mxu1 %v968_v28 }
 0x1fc   : > { %2313 = vmatprep.mubr.msk.bf16.mxu1 %vm2468_vm5, %v2467_v0 }
 0x2bb   : > { %v1094_v30 = vpop.f32.mrf.mxu1 }
 0x2bc   : > { %v1095_v31 = vadd.f32 %v2140_v29, %v1094_v30  ;;  %v2416_v30 = vld [vmem:[%s3037_s0] sm:$0xff]  }
 0x2bd   : > { %v1096_v32 = vpop.f32.mrf.mxu1 }
 0x2be   : > { %2437 = vtanh.f32 %v1095_v31 }
 0x2bf   : > { %v1097_v33 = vpop.f32.mrf.mxu1 }
 0x2c1   : > { %v1098_v34 = vpop.f32.mrf.mxu1 }
 0x2cb   : > { %v2438_v35 = vpop.eup %2437 }
 0x2cc   : > { %v1101_v36 = vadd.f32 %v2438_v35, %v2436_v12  ;;  %v2411_v12 = vld [vmem:[%s3037_s0 + $0x28] sm:$0xff]  }
 0x2cd   : > { %2302 = vmatpush3.bf16.msra.mxu1 %v2411_v12 }
 0x2ce   : > { %v1103_v37 = vsel %vm1102_vm12, %v1101_v36, 0.0  ;;  %2303 = vmatprep.subr.bf16.mxu1 %v2467_v0 }
 0x2cf   : > { %1104 = vadd.xlane.f32.xlu0 %v1103_v37 }
 0x2d1   : > { %2304 = vmatpush3.bf16.msra.mxu1 %v2412_v13 }
 0x2d2   : > { %2305 = vmatprep.subr.bf16.mxu1 %v2467_v0 }
 0x2d5   : > { %2306 = vmatpush3.bf16.msra.mxu1 %v2413_v14 }
 0x2d6   : > { %2307 = vmatprep.subr.bf16.mxu1 %v2467_v0 }
 0x2d9   : > { %2308 = vmatpush3.bf16.msra.mxu1 %v2414_v15 }
 0x2da   : > { %2309 = vmatprep.subr.bf16.mxu1 %v2467_v0 }
 0x2dd   : > { %2310 = vmatpush3.bf16.msra.mxu1 %v2415_v16 }
 0x2de   : > { %2311 = vmatprep.subr.bf16.mxu1 %v2467_v0 }
 0x2e1   : > { %2312 = vmatpush3.bf16.msra.mxu1 %v2416_v30 }
 0x2e2   : > { %2345 = vmatprep.subr.bf16.mxu1 %v2467_v0 }
 0x2e5   : > { %1291 = vrot.lane.b32.xlu0 %v1285_v38, %s3012_s30 }
 0x2e9   : > { %1299 = vrot.lane.b32.xlu0 %v1289_v39, %s3010_s2  ;;  %s3038_s2 = sld [smem:[#allocation12_spill]] }
 0x2ef   : > { %v2154_v17 = vld [vmem:[%s3038_s2] ss:$0 sm:$0xff] }
 0x358   : > { %v1105_v40 = vpop.xlane.xlu0 %1104 }
 0x359   : > { %v1107_v41 = vmul.f32 0.03125, %v1105_v40 }
 0x35b   : > { %v1108_v42 = vsub.f32 %v1101_v36, %v1107_v41 }
 0x35c   : > { %v1292_v2 = vpop.permute.xlu0 %1291 }
 0x35d   : > { %v1109_v43 = vmul.f32 %v1108_v42, %v1108_v42  ;;  %v1302_v4 = vsel %vm845_vm3, %v1283_v1, %v1292_v2 }
 0x35f   : > { %v1110_v44 = vsel %vm1102_vm12, %v1109_v43, 0.0 }
 0x360   : > { %1111 = vadd.xlane.f32.xlu1 %v1110_v44  ;;  %v1300_v8 = vpop.permute.xlu0 %1299 }
 0x371   : > { %1295 = vrot.lane.b32.xlu1 %v1287_v45, %s3014_s11  ;;  %s3042_s11 = sld [smem:[#allocation16_spill]] }
 0x377   : > { %v2169_v41 = vld [vmem:[%s3042_s11] ss:$0 sm:$0xff] }
 0x3e9   : > { %v1112_v48 = vpop.xlane.xlu1 %1111 }
 0x3ea   : > { %v1113_v49 = vmul.f32 0.03125, %v1112_v48 }
 0x3ec   : > { %v1114_v50 = vadd.f32 1e-05, %v1113_v49 }
 0x3ed   : > { %v1296_v6 = vpop.permute.xlu1 %1295 }
 0x3ee   : > { %2439 = vrsqrt.f32 %v1114_v50  ;;  %v1303_v7 = vsel %vm897_vm6, %v1302_v4, %v1296_v6 }
 0x3ef   : > { %v1304_v10 = vsel %vm966_vm11, %v1303_v7, %v1300_v8 }
 0x3f0   : > { %v1305_v11 = vpack.c.bf16 %v1304_v10, %v1304_v10 }
 0x3fb   : > { %v2440_v51 = vpop.eup %2439 }
 0x3fc   : > { %v1116_v53 = vmul.f32 %v2440_v51, %v1108_v42 }
 0x3fe   : > { %v1124_v55 = vmul.f32 %v2739_v52, %v1116_v53 }
 0x400   : > { %v1132_v56 = vadd.f32 %v2744_v54, %v1124_v55 }
 0x402   : > { %v1133_v58 = vpack.c.bf16 %v1132_v56, %v1132_v56 }
 0x404   : > { %2278 = vmatmul.mubr.msk.bf16.vlgmr.msra.gmra.mxu0 %vm845_vm3, %v1133_v58  ;;  %v2418_v58 = vld [vmem:[%s3043_s28] sm:$0xff]  }
 0x405   : > { %2282 = vmatpush3.bf16.msra.mxu0 %v2403_v57  ;;  %2297 = vmatprep.mubr.msk.bf16.mxu0 %vm2468_vm5, %v2467_v0  ;;  %v2417_v57 = vld [vmem:[%s3043_s28 + $0x8] sm:$0xff]  }
 0x406   : > { %2283 = vmatprep.subr.bf16.mxu0 %v2467_v0 }
 0x409   : > { %2284 = vmatpush3.bf16.msra.mxu0 %v2404_v59 }
 0x40a   : > { %2285 = vmatprep.subr.bf16.mxu0 %v2467_v0 }
 0x40d   : > { %2286 = vmatpush3.bf16.msra.mxu0 %v2405_v60 }
 0x40e   : > { %2287 = vmatprep.subr.bf16.mxu0 %v2467_v0 }
 0x411   : > { %2288 = vmatpush3.bf16.msra.mxu0 %v2406_v61 }
 0x412   : > { %2289 = vmatprep.subr.bf16.mxu0 %v2467_v0 }
 0x415   : > { %2290 = vmatpush3.bf16.msra.mxu0 %v2407_v62 }
 0x416   : > { %2291 = vmatprep.subr.bf16.mxu0 %v2467_v0 }
 0x419   : > { %2292 = vmatpush3.bf16.msra.mxu0 %v2408_v63 }
 0x41a   : > { %2293 = vmatprep.subr.bf16.mxu0 %v2467_v0 }
 0x41d   : > { %2294 = vmatpush3.bf16.msra.mxu0 %v2409_v5  ;;  %v2179_v5 = vld [vmem:[%s2987_s12] ss:$0 sm:$0xff] }
 0x41e   : > { %2295 = vmatprep.subr.bf16.mxu0 %v2467_v0 }
 0x421   : > { %2296 = vmatpush3.bf16.msra.mxu0 %v2410_v9 }
 0x422   : > { %2317 = vmatprep.subr.bf16.mxu0 %v2467_v0 }
 0x424   : > { %2298 = vmatmul.mubr.bf16.vlgmr.msra.gmra.mxu0 %v1305_v11 }
 0x425   : > { %2321 = vmatprep.mubr.msk.bf16.mxu0 %vm2468_vm5, %v2467_v0  ;;  %2318 = vmatpush3.bf16.msra.mxu0 %v2417_v57 }
 0x426   : > { %2319 = vmatprep.subr.bf16.mxu0 %v2467_v0 }
 0x429   : > { %2320 = vmatpush3.bf16.msra.mxu0 %v2418_v58 }
 0x42a   : > { %2325 = vmatprep.subr.bf16.mxu0 %v2467_v0 }
 0x4c4   : > { %v1194_v18 = vpop.f32.mrf.mxu0 }
 0x4c5   : > { %v1195_v19 = vadd.f32 %v2154_v17, %v1194_v18 }
 0x4c6   : > { %v2279_v20 = vpop.f32.mrf.mxu0 }
 0x4c7   : > { %2441 = vtanh.f32 %v1195_v19 }
 0x4c8   : > { %v1197_v21 = vpop.f32.mrf.mxu0 }
 0x4ca   : > { %v2280_v22 = vpop.f32.mrf.mxu0 }
 0x4d4   : > { %v2811_v23 = vpop.eup %2441 }
 0x4d5   : > { %1201 = vst [vmem:[#allocation3] ss:$2 sm:$0x1f] %v2811_v23 }
 0x4e4   : > { %v1411_v25 = vpop.f32.mrf.mxu0 }
 0x4e5   : > { %v1412_v26 = vadd.f32 %v2160_v24, %v1411_v25 }
 0x4e6   : > { %v2299_v27 = vpop.f32.mrf.mxu0 }
 0x4e7   : > { %2443 = vtanh.f32 %v1412_v26 }
 0x4e8   : > { %v1414_v28 = vpop.f32.mrf.mxu0 }
 0x4ea   : > { %v2300_v29 = vpop.f32.mrf.mxu0 }
 0x4f4   : > { %v2444_v31 = vpop.eup %2443 }
 0x4f5   : > { %v1419_v32 = vrot.slane %v2444_v31, 6 }
 0x4f7   : > { %v1421_v33 = vsel %vm1247_vm7, 0.0, %v1419_v32  ;;  %v2420_v32 = vld [vmem:[%s2990_s15 + $0x10] sm:$0xff]  }
 0x4f8   : > { %v1427_v34 = vrot.slane %v1421_v33, 2  ;;  %v1423_v35 = vrot.slane %v1421_v33, 1 }
 0x4fa   : > { %1428 = vrot.lane.b32.xlu0 %v1427_v34, %s3040_s29  ;;  %1424 = vrot.lane.b32.xlu1 %v1423_v35, %s3041_s6 }
 0x56c   : > { %v1429_v36 = vpop.permute.xlu0 %1428  ;;  %v1425_v37 = vpop.permute.xlu1 %1424 }
 0x56d   : > { %v1431_v38 = vsel %vm845_vm3, %v1421_v33, %v1425_v37  ;;  %v2421_v33 = vld [vmem:[%s2990_s15 + $0x8] sm:$0xff]   ;;  %v2422_v37 = vld [vmem:[%s2990_s15] sm:$0xff]  }
 0x56e   : > { %v1432_v39 = vsel %vm897_vm6, %v1431_v38, %v1429_v36 }
 0x56f   : > { %v1433_v40 = vpack.c.bf16 %v1432_v39, %v1432_v39 }
 0x571   : > { %2314 = vmatmul.mubr.msk.bf16.vlgmr.msra.gmra.mxu1 %vm966_vm11, %v1433_v40 }
 0x572   : > { %2361 = vmatprep.mubr.msk.bf16.mxu1 %vm2468_vm5, %v2467_v0 }
 0x631   : > { %v1526_v42 = vpop.f32.mrf.mxu1 }
 0x632   : > { %v1527_v43 = vadd.f32 %v2169_v41, %v1526_v42 }
 0x633   : > { %v2315_v44 = vpop.f32.mrf.mxu1 }
 0x634   : > { %2445 = vtanh.f32 %v1527_v43 }
 0x635   : > { %v1529_v45 = vpop.f32.mrf.mxu1 }
 0x637   : > { %v2316_v46 = vpop.f32.mrf.mxu1 }
 0x641   : > { %v2446_v47 = vpop.eup %2445 }
 0x642   : > { %v1533_v48 = vadd.f32 %v2446_v47, %v2444_v31 }
 0x644   : > { %v1535_v49 = vsel %vm1534_vm13, %v1533_v48, 0.0 }
 0x645   : > { %1536 = vadd.xlane.f32.xlu1 %v1535_v49 }
 0x6ce   : > { %v1537_v50 = vpop.xlane.xlu1 %1536 }
 0x6cf   : > { %v1538_v51 = vmul.f32 0.03125, %v1537_v50 }
 0x6d1   : > { %v1539_v53 = vsub.f32 %v1533_v48, %v1538_v51 }
 0x6d3   : > { %v1540_v55 = vmul.f32 %v1539_v53, %v1539_v53 }
 0x6d5   : > { %v1541_v56 = vsel %vm1534_vm13, %v1540_v55, 0.0 }
 0x6d6   : > { %1542 = vadd.xlane.f32.xlu0 %v1541_v56 }
 0x75f   : > { %v1543_v59 = vpop.xlane.xlu0 %1542 }
 0x760   : > { %v1544_v60 = vmul.f32 0.03125, %v1543_v59 }
 0x762   : > { %v1545_v61 = vadd.f32 1e-05, %v1544_v60 }
 0x764   : > { %2447 = vrsqrt.f32 %v1545_v61 }
 0x771   : > { %v2448_v62 = vpop.eup %2447 }
 0x772   : > { %v1547_v63 = vmul.f32 %v2448_v62, %v1539_v53  ;;  %v2185_v53 = vld [vmem:[%s2991_s16] ss:$0 sm:$0xff] }
 0x774   : > { %v1555_v1 = vmul.f32 %v2739_v52, %v1547_v63 }
 0x776   : > { %v1563_v2 = vadd.f32 %v2744_v54, %v1555_v1  ;;  %v2423_v1 = vld [vmem:[%s2994_s19 + $0x8] sm:$0xff]  }
 0x778   : > { %v1564_v4 = vpack.c.bf16 %v1563_v2, %v1563_v2  ;;  %v2424_v2 = vld [vmem:[%s2994_s19] sm:$0xff]  }
 0x77a   : > { %2322 = vmatmul.mubr.msk.bf16.vlgmr.msra.gmra.mxu0 %vm845_vm3, %v1564_v4  ;;  %v2425_v4 = vld [vmem:[%s2996_s21 + $0x38] sm:$0xff]  }
 0x77b   : > { %2333 = vmatprep.mubr.msk.bf16.mxu0 %vm2468_vm5, %v2467_v0  ;;  %2346 = vmatpush3.bf16.msra.mxu1 %v2425_v4 }
 0x77c   : > { %2347 = vmatprep.subr.bf16.mxu1 %v2467_v0 }
 0x83a   : > { %v1625_v6 = vpop.f32.mrf.mxu0 }
 0x83b   : > { %v1626_v7 = vadd.f32 %v2179_v5, %v1625_v6  ;;  %v2426_v5 = vld [vmem:[%s2996_s21 + $0x30] sm:$0xff]   ;;  %v2427_v6 = vld [vmem:[%s2996_s21 + $0x28] sm:$0xff]  }
 0x83c   : > { %v2323_v8 = vpop.f32.mrf.mxu0  ;;  %2348 = vmatpush3.bf16.msra.mxu1 %v2426_v5 }
 0x83d   : > { %2449 = vtanh.f32 %v1626_v7  ;;  %2349 = vmatprep.subr.bf16.mxu1 %v2467_v0  ;;  %v2428_v7 = vld [vmem:[%s2996_s21 + $0x20] sm:$0xff]   ;;  %v2429_v8 = vld [vmem:[%s2996_s21 + $0x18] sm:$0xff]  }
 0x83e   : > { %v1628_v9 = vpop.f32.mrf.mxu0 }
 0x83f   : > { %v2430_v9 = vld [vmem:[%s2996_s21 + $0x10] sm:$0xff]  }
 0x840   : > { %v2324_v10 = vpop.f32.mrf.mxu0  ;;  %2350 = vmatpush3.bf16.msra.mxu1 %v2427_v6 }
 0x841   : > { %2351 = vmatprep.subr.bf16.mxu1 %v2467_v0  ;;  %v2431_v10 = vld [vmem:[%s2996_s21 + $0x8] sm:$0xff]  }
 0x844   : > { %2352 = vmatpush3.bf16.msra.mxu1 %v2428_v7 }
 0x845   : > { %2353 = vmatprep.subr.bf16.mxu1 %v2467_v0 }
 0x848   : > { %2354 = vmatpush3.bf16.msra.mxu1 %v2429_v8 }
 0x849   : > { %2355 = vmatprep.subr.bf16.mxu1 %v2467_v0 }
 0x84a   : > { %v2450_v11 = vpop.eup %2449 }
 0x84b   : > { %1632 = vst [vmem:[#allocation5] ss:$4 sm:$0x7] %v2450_v11  ;;  %1639 = vrot.lane.b32.xlu1 %v2450_v11, %s3040_s29  ;;  %1634 = vrot.lane.b32.xlu0 %v2450_v11, %s3044_s8 }
 0x84c   : > { %2356 = vmatpush3.bf16.msra.mxu1 %v2430_v9 }
 0x84d   : > { %2357 = vmatprep.subr.bf16.mxu1 %v2467_v0 }
 0x84f   : > { %1644 = vrot.lane.b32.xlu1 %v2450_v11, %s3041_s6  ;;  %1203 = vrot.lane.b32.xlu0 %v2811_v23, %s3044_s8 }
 0x850   : > { %2358 = vmatpush3.bf16.msra.mxu1 %v2431_v10 }
 0x851   : > { %2359 = vmatprep.subr.bf16.mxu1 %v2467_v0 }
 0x8bd   : > { %v1640_v12 = vpop.permute.xlu1 %1639  ;;  %v1635_v13 = vpop.permute.xlu0 %1634 }
 0x8be   : > { %1643 = vst [vmem:[#allocation5 + $0x2] ss:$4 sm:$0x7] %v1640_v12  ;;  %1638 = vst [vmem:[#allocation5 + $0x1] ss:$4 sm:$0x7] %v1635_v13 }
 0x8c1   : > { %v1645_v14 = vpop.permute.xlu1 %1644  ;;  %v1204_v15 = vpop.permute.xlu0 %1203 }
 0x8c2   : > { %1648 = vst [vmem:[#allocation5 + $0x3] ss:$4 sm:$0x7] %v1645_v14  ;;  %1207 = vst [vmem:[#allocation3 + $0x1] ss:$2 sm:$0x1f] %v1204_v15 }
 0x8c3   : > { %v2191_v15 = vld [vmem:[%s2992_s17] ss:$0 sm:$0xff] }
 0x8c9   : > { %v1208_v16 = vld [vmem:[#allocation3] sm:$0xff] }
 0x8ca   : > { %v1649_v17 = vld [vmem:[#allocation5] sm:$0xff]  ;;  %v1209_v18 = vadd.f32 %v1208_v16, %v2637_v3 }
 0x8cb   : > { %v1650_v19 = vadd.f32 %v1649_v17, %v2637_v3  ;;  %v2419_v3 = vld [vmem:[%s2990_s15 + $0x18] sm:$0xff]   ;;  %v2192_v17 = vld [vmem:[%s2993_s18] ss:$0 sm:$0xff] }
 0x8cc   : > { %v1210_v20 = vsel %vm845_vm3, %v1209_v18, 0.0  ;;  %2326 = vmatpush3.bf16.msra.mxu0 %v2419_v3 }
 0x8cd   : > { %v1651_v21 = vsel %vm845_vm3, %v1650_v19, 0.0  ;;  %1211 = vadd.xlane.f32.xlu0 %v1210_v20  ;;  %2327 = vmatprep.subr.bf16.mxu0 %v2467_v0 }
 0x8ce   : > { %1652 = vadd.xlane.f32.xlu1 %v1651_v21  ;;  %v2432_v21 = vld [vmem:[%s2996_s21] sm:$0xff]  }
 0x8cf   : > { %2360 = vmatpush3.bf16.msra.mxu1 %v2432_v21 }
 0x8d0   : > { %2328 = vmatpush3.bf16.msra.mxu0 %v2420_v32 }
 0x8d1   : > { %2329 = vmatprep.subr.bf16.mxu0 %v2467_v0 }
 0x8d4   : > { %2330 = vmatpush3.bf16.msra.mxu0 %v2421_v33 }
 0x8d5   : > { %2331 = vmatprep.subr.bf16.mxu0 %v2467_v0 }
 0x8d8   : > { %2332 = vmatpush3.bf16.msra.mxu0 %v2422_v37 }
 0x8d9   : > { %2337 = vmatprep.subr.bf16.mxu0 %v2467_v0 }
 0x956   : > { %v1212_v22 = vpop.xlane.xlu0 %1211 }
 0x957   : > { %v1653_v23 = vpop.xlane.xlu1 %1652  ;;  %v1213_v24 = vmul.f32 0.03125, %v1212_v22  ;;  %v2193_v22 = vld [vmem:[%s2995_s20] ss:$0 sm:$0xff] }
 0x958   : > { %v1654_v25 = vmul.f32 0.03125, %v1653_v23 }
 0x959   : > { %v1214_v26 = vsub.f32 %v1209_v18, %v1213_v24 }
 0x95a   : > { %v1655_v27 = vsub.f32 %v1650_v19, %v1654_v25 }
 0x95b   : > { %v1215_v28 = vmul.f32 %v1214_v26, %v1214_v26 }
 0x95c   : > { %v1656_v29 = vmul.f32 %v1655_v27, %v1655_v27 }
 0x95d   : > { %v1216_v30 = vsel %vm845_vm3, %v1215_v28, 0.0 }
 0x95e   : > { %v1657_v31 = vsel %vm845_vm3, %v1656_v29, 0.0  ;;  %1217 = vadd.xlane.f32.xlu1 %v1216_v30  ;;  %v2197_v29 = vld [vmem:[%s2997_s22] ss:$0 sm:$0xff] }
 0x95f   : > { %1658 = vadd.xlane.f32.xlu0 %v1657_v31 }
 0x9e7   : > { %v1218_v42 = vpop.xlane.xlu1 %1217 }
 0x9e8   : > { %v1659_v34 = vpop.xlane.xlu0 %1658  ;;  %v1219_v43 = vmul.f32 0.03125, %v1218_v42  ;;  %v2434_v42 = vld [vmem:[%s3000_s25] sm:$0xff]  }
 0x9e9   : > { %v1660_v35 = vmul.f32 0.03125, %v1659_v34 }
 0x9ea   : > { %v1220_v44 = vadd.f32 1e-05, %v1219_v43 }
 0x9eb   : > { %v1661_v36 = vadd.f32 1e-05, %v1660_v35 }
 0x9ed   : > { %2451 = vrsqrt.f32 %v1661_v36 }
 0x9ee   : > { %2453 = vrsqrt.f32 %v1220_v44 }
 0x9fa   : > { %v2452_v38 = vpop.eup %2451 }
 0x9fb   : > { %v1663_v39 = vmul.f32 %v2452_v38, %v1655_v27  ;;  %v2454_v45 = vpop.eup %2453 }
 0x9fc   : > { %v1222_v46 = vmul.f32 %v2454_v45, %v1214_v26 }
 0x9fd   : > { %v1671_v40 = vmul.f32 %v2739_v52, %v1663_v39 }
 0x9fe   : > { %v1230_v47 = vmul.f32 %v2739_v52, %v1222_v46 }
 0x9ff   : > { %v1679_v41 = vadd.f32 %v2744_v54, %v1671_v40 }
 0xa00   : > { %v1238_v48 = vadd.f32 %v2744_v54, %v1230_v47  ;;  %v2206_v47 = vld [vmem:[%s2998_s23] ss:$0 sm:$0xff] }
 0xa01   : > { %1681 = vrot.lane.b32.xlu0 %v1679_v41, %s3041_s6  ;;  %v2433_v41 = vld [vmem:[%s3000_s25 + $0x8] sm:$0xff]   ;;  %s3045_s6 = sshll.u32 %s3047_s4, 3 }
 0xa02   : > { %s813_s11 = scalar_lea.vmem %s3002_s27, %s3045_s6 }
 0xa73   : > { %v1682_v49 = vpop.permute.xlu0 %1681 }
 0xa74   : > { %v1684_v50 = vsel %vm845_vm3, %v1238_v48, %v1682_v49  ;;  %v2207_v49 = vld [vmem:[%s2999_s24] ss:$0 sm:$0xff] }
 0xa75   : > { %v1685_v51 = vpack.c.bf16 %v1684_v50, %v1684_v50 }
 0xa77   : > { %2334 = vmatmul.mubr.msk.bf16.vlgmr.msra.gmra.mxu0 %vm897_vm6, %v1685_v51 }
 0xa78   : > { %2341 = vmatprep.mubr.msk.bf16.mxu0 %vm2468_vm5, %v2467_v0  ;;  %2338 = vmatpush3.bf16.msra.mxu0 %v2423_v1 }
 0xa79   : > { %2339 = vmatprep.subr.bf16.mxu0 %v2467_v0 }
 0xa7c   : > { %2340 = vmatpush3.bf16.msra.mxu0 %v2424_v2 }
 0xa7d   : > { %2365 = vmatprep.subr.bf16.mxu0 %v2467_v0 }
 0xb37   : > { %v1762_v55 = vpop.f32.mrf.mxu0 }
 0xb38   : > { %v2887_v56 = vadd.f32 %v2185_v53, %v1762_v55 }
 0xb39   : > { %v2335_v57 = vpop.f32.mrf.mxu0 }
 0xb3a   : > { %v1768_v52 = vsel %vm845_vm3, %v2887_v56, 0.0 }
 0xb3b   : > { %1769 = vadd.xlane.f32.xlu1 %v1768_v52  ;;  %v1765_v54 = vpop.f32.mrf.mxu0 }
 0xb3d   : > { %v2336_v58 = vpop.f32.mrf.mxu0 }
 0xbc4   : > { %v1770_v59 = vpop.xlane.xlu1 %1769 }
 0xbc5   : > { %v1771_v60 = vmul.f32 0.03125, %v1770_v59 }
 0xbc7   : > { %v1772_v61 = vsub.f32 %v2887_v56, %v1771_v60 }
 0xbc9   : > { %v1773_v62 = vmul.f32 %v1772_v61, %v1772_v61 }
 0xbcb   : > { %v1774_v63 = vsel %vm845_vm3, %v1773_v62, 0.0 }
 0xbcc   : > { %1775 = vadd.xlane.f32.xlu1 %v1774_v63 }
 0xc55   : > { %v1776_v11 = vpop.xlane.xlu1 %1775 }
 0xc56   : > { %v1777_v12 = vmul.f32 0.03125, %v1776_v11 }
 0xc58   : > { %v1778_v13 = vadd.f32 1e-05, %v1777_v12 }
 0xc5a   : > { %2455 = vrsqrt.f32 %v1778_v13 }
 0xc67   : > { %v2456_v14 = vpop.eup %2455 }
 0xc68   : > { %v1780_v16 = vmul.f32 %v2456_v14, %v1772_v61 }
 0xc6a   : > { %v1788_v18 = vmul.f32 %v2191_v15, %v1780_v16 }
 0xc6c   : > { %v1796_v19 = vadd.f32 %v2192_v17, %v1788_v18 }
 0xc6e   : > { %v1797_v20 = vpack.c.bf16 %v1796_v19, %v1796_v19 }
 0xc70   : > { %2342 = vmatmul.mubr.msk.bf16.vlgmr.msra.gmra.mxu0 %vm845_vm3, %v1797_v20 }
 0xc71   : > { %2369 = vmatprep.mubr.msk.bf16.mxu0 %vm2468_vm5, %v2467_v0  ;;  %2366 = vmatpush3.bf16.msra.mxu0 %v2433_v41 }
 0xc72   : > { %2367 = vmatprep.subr.bf16.mxu0 %v2467_v0  ;;  %v2208_v0 = vld [vmem:[%s3001_s26] ss:$0 sm:$0xff] }
 0xc75   : > { %2368 = vmatpush3.bf16.msra.mxu0 %v2434_v42 }
 0xd30   : > { %v1858_v23 = vpop.f32.mrf.mxu0 }
 0xd31   : > { %v1859_v24 = vadd.f32 %v2193_v22, %v1858_v23 }
 0xd32   : > { %v2343_v25 = vpop.f32.mrf.mxu0 }
 0xd33   : > { %v1864_v26 = vpack.c.bf16 %v1859_v24, %v1859_v24 }
 0xd34   : > { %v1861_v27 = vpop.f32.mrf.mxu0 }
 0xd35   : > { %2362 = vmatmul.mubr.bf16.vlgmr.msra.gmra.mxu1 %v1864_v26 }
 0xd36   : > { %v2344_v28 = vpop.f32.mrf.mxu0 }
 0xdf5   : > { %v1970_v30 = vpop.f32.mrf.mxu1 }
 0xdf6   : > { %v1971_v31 = vadd.f32 %v2197_v29, %v1970_v30 }
 0xdf7   : > { %v2363_v3 = vpop.f32.mrf.mxu1 }
 0xdf8   : > { %v1976_v32 = vadd.f32 %v1971_v31, %v2887_v56 }
 0xdf9   : > { %v1973_v33 = vpop.f32.mrf.mxu1 }
 0xdfa   : > { %v1977_v34 = vsel %vm845_vm3, %v1976_v32, 0.0 }
 0xdfb   : > { %1978 = vadd.xlane.f32.xlu1 %v1977_v34  ;;  %v2364_v35 = vpop.f32.mrf.mxu1 }
 0xe84   : > { %v1979_v36 = vpop.xlane.xlu1 %1978 }
 0xe85   : > { %v1980_v37 = vmul.f32 0.03125, %v1979_v36 }
 0xe87   : > { %v1981_v38 = vsub.f32 %v1976_v32, %v1980_v37 }
 0xe89   : > { %v1982_v39 = vmul.f32 %v1981_v38, %v1981_v38 }
 0xe8b   : > { %v1983_v40 = vsel %vm845_vm3, %v1982_v39, 0.0 }
 0xe8c   : > { %1984 = vadd.xlane.f32.xlu1 %v1983_v40 }
 0xf15   : > { %v1985_v43 = vpop.xlane.xlu1 %1984 }
 0xf16   : > { %v1986_v44 = vmul.f32 0.03125, %v1985_v43 }
 0xf18   : > { %v1987_v45 = vadd.f32 1e-05, %v1986_v44 }
 0xf1a   : > { %2457 = vrsqrt.f32 %v1987_v45 }
 0xf27   : > { %v2458_v46 = vpop.eup %2457 }
 0xf28   : > { %v1989_v48 = vmul.f32 %v2458_v46, %v1981_v38 }
 0xf2a   : > { %v1997_v50 = vmul.f32 %v2206_v47, %v1989_v48 }
 0xf2c   : > { %v2005_v51 = vadd.f32 %v2207_v49, %v1997_v50 }
 0xf2e   : > { %v2006_v53 = vpack.c.bf16 %v2005_v51, %v2005_v51 }
 0xf30   : > { %2370 = vmatmul.mubr.msk.bf16.vlgmr.msra.gmra.mxu0 %vm845_vm3, %v2006_v53 }
 0xff0   : > { %v2067_v55 = vpop.f32.mrf.mxu0 }
 0xff1   : > { %v2068_v56 = vadd.f32 %v2208_v0, %v2067_v55 }
 0xff2   : > { %v2371_v57 = vpop.f32.mrf.mxu0 }
 0xff3   : > { %2073 = vst [vmem:[%s813_s11] sm:$0xff] %v2068_v56 }
 0xff4   : > { %v2070_v52 = vpop.f32.mrf.mxu0 }
 0xff6   : > { %v2372_v54 = vpop.f32.mrf.mxu0 }
 0xff7 PF: > { %s37_s7 = sadd.s32 1, %s2465_s7  }
 0xff8   : > { %p34_p4 = scmp.ge.s32.totalorder %s37_s7, 4  }
 0xffa   :  { %36 = sbr.rel (!%p34_p4) target bundleno = 13 (0xd), region = 166 }

</bundles_post_ra>
